<compile_context>
chip_gen: v5e
topology: v5e:2x2
jax: 0.10.0
libtpu: 0.0.40
codegen_flags: <defaults>
</compile_context>

<pallas_src>
import functools
import math

import jax
import jax.numpy as jnp
from jax import lax
from jax.experimental import pallas as pl
from jax.experimental.pallas import tpu as pltpu


# ---------------------------------------------------------------------------
# Fused multi-head attention kernel: single invocation, both batches at once.
# Row r of every (rows, E) slab belongs to batch (r % n_batch).
# ---------------------------------------------------------------------------
def _mha_kernel(xq_ref, xk_ref, xv_ref,
                wq_ref, wk_ref, wv_ref, wo_ref,
                bq_ref, bk_ref, bv_ref, bo_ref,
                o_ref, oh_ref, *, num_heads, head_dim, n_batch):
    f32 = jnp.float32
    bf16 = jnp.bfloat16

    # --- Projections: one full-row bf16 matmul each, f32 accumulate. -----------
    q = (jnp.dot(xq_ref[...].astype(bf16), wq_ref[...],
                 preferred_element_type=f32) + bq_ref[...]).astype(bf16)
    k = (jnp.dot(xk_ref[...].astype(bf16), wk_ref[...],
                 preferred_element_type=f32) + bk_ref[...]).astype(bf16)
    v = (jnp.dot(xv_ref[...].astype(bf16), wv_ref[...],
                 preferred_element_type=f32) + bv_ref[...]).astype(bf16)

    R = q.shape[0]   # N*L query rows (batch-interleaved)
    C = k.shape[0]   # N*S key/value rows (batch-interleaved)

    # Block-diagonal additive mask: query row r only attends key row c when they
    # belong to the same batch.  Computed once, reused for every head.
    rb = lax.broadcasted_iota(jnp.int32, (R, C), 0) % n_batch
    cb = lax.broadcasted_iota(jnp.int32, (R, C), 1) % n_batch
    neg = jnp.where(rb == cb, 0.0, -1e30).astype(f32)

    nt = (((1,), (1,)), ((), ()))  # contract last dims: A @ B^T without an explicit .T
    for h in range(num_heads):     # static Python loop -> fully unrolled
        lo = h * head_dim
        hi = lo + head_dim
        qh = q[:, lo:hi]           # (R, Dh) bf16
        kh = k[:, lo:hi]           # (C, Dh) bf16
        vh = v[:, lo:hi]           # (C, Dh) bf16

        s = lax.dot_general(qh, kh, nt, preferred_element_type=f32) + neg  # (R, C)
        s = s - jnp.max(s, axis=-1, keepdims=True)
        p = jnp.exp(s)
        p = p * pl.reciprocal(jnp.sum(p, axis=-1, keepdims=True), approx=False)
        oh = jnp.dot(p.astype(bf16), vh, preferred_element_type=f32)       # (R, Dh)

        # Deposit this head's 16-lane slice of the concatenated head outputs so the
        # output projection below is ONE full contraction-depth (K=E) matmul.
        oh_ref[:, lo:hi] = oh.astype(bf16)

    o_ref[...] = (jnp.dot(oh_ref[...], wo_ref[...],
                          preferred_element_type=f32) + bo_ref[...])


# ---------------------------------------------------------------------------
# Wrapper: one fused pallas_call (matches torch.nn.MultiheadAttention, no masks)
# ---------------------------------------------------------------------------
def multihead_attention(x1, x2, x3, params, num_heads):
    L, N, E = x1.shape
    S = x2.shape[0]
    assert x2.shape == (S, N, E) and x3.shape == (S, N, E), (x2.shape, x3.shape)
    assert E % num_heads == 0, (E, num_heads)
    Dh = E // num_heads
    R, C = N * L, N * S
    # Layout requirements for the lane-dense fused kernel.
    assert E % 128 == 0 and R % 8 == 0 and C % 8 == 0, (L, S, N, E)

    scale = 1.0 / math.sqrt(Dh)
    bf16 = jnp.bfloat16
    # Pre-transpose weights once to (E_in, E_out), cast to bf16 (halves weight DMA),
    # and fold the query scale into the q projection.  Biases stay f32 (added after
    # the f32-accumulated matmul).
    wqt = (params["wq"] * scale).T.astype(bf16)
    wkt = params["wk"].T.astype(bf16)
    wvt = params["wv"].T.astype(bf16)
    wot = params["wo"].T.astype(bf16)
    bq = (params["bq"] * scale).reshape(1, E)
    bk = params["bk"].reshape(1, E)
    bv = params["bv"].reshape(1, E)
    bo = params["bo"].reshape(1, E)

    # (L, N, E) -> (L*N, E): pure leading-dim collapse == free bitcast (NO transpose,
    # no HBM round trip).  Row r = l*N + n, so row r belongs to batch r % N.
    xq = x1.reshape(R, E)
    xk = x2.reshape(C, E)
    xv = x3.reshape(C, E)

    flops = int(2 * R * E * E          # q projection
                + 4 * C * E * E        # k + v projections
                + 4 * R * C * Dh * num_heads   # scores + PV (incl. masked block)
                + 2 * R * E * E)       # output projection
    transcendentals = int(num_heads * R * (C + 1))
    bytes_accessed = int(4 * (R * E + 2 * C * E + R * E + 4 * E) + 2 * 4 * E * E)

    kernel = functools.partial(_mha_kernel, num_heads=num_heads,
                               head_dim=Dh, n_batch=N)
    full = lambda i: (0, 0)
    y = pl.pallas_call(
        kernel,
        out_shape=jax.ShapeDtypeStruct((R, E), jnp.float32),
        grid=(1,),                      # single step: whole problem fits in VMEM
        in_specs=[
            pl.BlockSpec((R, E), full),   # query rows (all batches)
            pl.BlockSpec((C, E), full),   # key rows
            pl.BlockSpec((C, E), full),   # value rows
            pl.BlockSpec((E, E), full),   # Wq^T (pre-scaled, bf16)
            pl.BlockSpec((E, E), full),   # Wk^T (bf16)
            pl.BlockSpec((E, E), full),   # Wv^T (bf16)
            pl.BlockSpec((E, E), full),   # Wo^T (bf16)
            pl.BlockSpec((1, E), full),   # bq (pre-scaled, f32)
            pl.BlockSpec((1, E), full),   # bk
            pl.BlockSpec((1, E), full),   # bv
            pl.BlockSpec((1, E), full),   # bo
        ],
        out_specs=pl.BlockSpec((R, E), full),
        scratch_shapes=[pltpu.VMEM((R, E), bf16)],   # concatenated head outputs
        compiler_params=pltpu.CompilerParams(dimension_semantics=("arbitrary",)),
        cost_estimate=pl.CostEstimate(flops=flops,
                                      transcendentals=transcendentals,
                                      bytes_accessed=bytes_accessed),
    )(xq, xk, xv, wqt, wkt, wvt, wot, bq, bk, bv, bo)

    # (L*N, E) -> (L, N, E): splitting the leading dim back is again a free bitcast.
    return y.reshape(L, N, E)


# ---------------------------------------------------------------------------
# Pure-JAX f32 reference (exact softmax) for correctness
# ---------------------------------------------------------------------------
def mha_reference(x1, x2, x3, params, num_heads):
    L, N, E = x1.shape
    S = x2.shape[0]
    Dh = E // num_heads
    q = x1.reshape(L * N, E) @ params["wq"].T + params["bq"]
    k = x2.reshape(S * N, E) @ params["wk"].T + params["bk"]
    v = x3.reshape(S * N, E) @ params["wv"].T + params["bv"]
    q = q * (1.0 / math.sqrt(Dh))
    q = q.reshape(L, N * num_heads, Dh).transpose(1, 0, 2)
    k = k.reshape(S, N * num_heads, Dh).transpose(1, 0, 2)
    v = v.reshape(S, N * num_heads, Dh).transpose(1, 0, 2)
    p = jax.nn.softmax(jnp.einsum("bld,bsd->bls", q, k), axis=-1)
    o = jnp.einsum("bls,bsd->bld", p, v)
    o = o.transpose(1, 0, 2).reshape(L * N, E)
    y = o @ params["wo"].T + params["bo"]
    return y.reshape(L, N, E)


if __name__ == "__main__":
    # Small, self-consistent shapes (torch layout: (seq, batch, embed)).
    L, S, N, E, H = 8, 8, 2, 128, 8

    key = jax.random.PRNGKey(0)
    ks = jax.random.split(key, 8)
    wscale = 0.05
    params = {
        "wq": wscale * jax.random.normal(ks[0], (E, E), jnp.float32),
        "wk": wscale * jax.random.normal(ks[1], (E, E), jnp.float32),
        "wv": wscale * jax.random.normal(ks[2], (E, E), jnp.float32),
        "bq": wscale * jax.random.normal(ks[3], (E,), jnp.float32),
        "bk": wscale * jax.random.normal(ks[4], (E,), jnp.float32),
        "bv": wscale * jax.random.normal(ks[5], (E,), jnp.float32),
        "wo": wscale * jax.random.normal(ks[6], (E, E), jnp.float32),
        "bo": jnp.zeros((E,), jnp.float32),
    }

    kx = jax.random.split(jax.random.PRNGKey(0), 3)
    x1 = jax.random.normal(kx[0], (L, N, E), jnp.float32)
    x2 = jax.random.normal(kx[1], (S, N, E), jnp.float32)
    x3 = jax.random.normal(kx[2], (S, N, E), jnp.float32)

    mha_fn = jax.jit(functools.partial(multihead_attention, num_heads=H))
    out = jax.block_until_ready(mha_fn(x1, x2, x3, params))

    ref = jax.block_until_ready(mha_reference(x1, x2, x3, params, H))
    err = jnp.abs(out - ref)
    max_err = float(jnp.max(err))
    mean_err = float(jnp.mean(err))
    assert out.shape == (L, N, E), out.shape
    # Tolerance reflects bf16 matmul operands (f32 accumulation, exact softmax
    # reciprocal): expected max abs error ~1e-2 at these magnitudes.
    assert max_err < 3e-2, f"max abs err too large: {max_err}"
    assert mean_err < 5e-3, f"mean abs err too large: {mean_err}"

    print("KERNEL_OK")
</pallas_src>

<mosaic_0001>
module attributes {stable_mosaic.version = 11 : i64} {
  func.func @_mha_kernel(%arg0: i32, %arg1: memref<16x128xf32, #tpu.memory_space<vmem>>, %arg2: memref<16x128xf32, #tpu.memory_space<vmem>>, %arg3: memref<16x128xf32, #tpu.memory_space<vmem>>, %arg4: memref<128x128xbf16, #tpu.memory_space<vmem>>, %arg5: memref<128x128xbf16, #tpu.memory_space<vmem>>, %arg6: memref<128x128xbf16, #tpu.memory_space<vmem>>, %arg7: memref<128x128xbf16, #tpu.memory_space<vmem>>, %arg8: memref<1x128xf32, #tpu.memory_space<vmem>>, %arg9: memref<1x128xf32, #tpu.memory_space<vmem>>, %arg10: memref<1x128xf32, #tpu.memory_space<vmem>>, %arg11: memref<1x128xf32, #tpu.memory_space<vmem>>, %arg12: memref<16x128xf32, #tpu.memory_space<vmem>>, %arg13: memref<16x128xbf16, #tpu.memory_space<vmem>>) attributes {dimension_semantics = [#tpu.dimension_semantics<arbitrary>], iteration_bounds = array<i64: 1>, scalar_prefetch = 0 : i64, scratch_operands = 1 : i64, tpu.core_type = #tpu.core_type<tc>, window_params = [{pipeline_mode = #tpu.pipeline_mode<synchronous>, transform_indices = @transform_0, window_bounds = array<i64: 16, 128>}, {pipeline_mode = #tpu.pipeline_mode<synchronous>, transform_indices = @transform_1, window_bounds = array<i64: 16, 128>}, {pipeline_mode = #tpu.pipeline_mode<synchronous>, transform_indices = @transform_2, window_bounds = array<i64: 16, 128>}, {pipeline_mode = #tpu.pipeline_mode<synchronous>, transform_indices = @transform_3, window_bounds = array<i64: 128, 128>}, {pipeline_mode = #tpu.pipeline_mode<synchronous>, transform_indices = @transform_4, window_bounds = array<i64: 128, 128>}, {pipeline_mode = #tpu.pipeline_mode<synchronous>, transform_indices = @transform_5, window_bounds = array<i64: 128, 128>}, {pipeline_mode = #tpu.pipeline_mode<synchronous>, transform_indices = @transform_6, window_bounds = array<i64: 128, 128>}, {pipeline_mode = #tpu.pipeline_mode<synchronous>, transform_indices = @transform_7, window_bounds = array<i64: 1, 128>}, {pipeline_mode = #tpu.pipeline_mode<synchronous>, transform_indices = @transform_8, window_bounds = array<i64: 1, 128>}, {pipeline_mode = #tpu.pipeline_mode<synchronous>, transform_indices = @transform_9, window_bounds = array<i64: 1, 128>}, {pipeline_mode = #tpu.pipeline_mode<synchronous>, transform_indices = @transform_10, window_bounds = array<i64: 1, 128>}, {pipeline_mode = #tpu.pipeline_mode<synchronous>, transform_indices = @transform_11, window_bounds = array<i64: 16, 128>}]} {
    %c0 = arith.constant 0 : index
    %c0_0 = arith.constant 0 : index
    %0 = vector.load %arg1[%c0, %c0_0] : memref<16x128xf32, #tpu.memory_space<vmem>>, vector<16x128xf32>
    %1 = arith.truncf %0 : vector<16x128xf32> to vector<16x128xbf16>
    %c0_1 = arith.constant 0 : index
    %c0_2 = arith.constant 0 : index
    %2 = vector.load %arg4[%c0_1, %c0_2] : memref<128x128xbf16, #tpu.memory_space<vmem>>, vector<128x128xbf16>
    %cst = arith.constant dense<0.000000e+00> : vector<16x128xf32>
    %3 = tpu.matmul %1, %2, %cst {dimension_numbers = #tpu.dot_dimension_numbers<[1], [0], [0], [1], [0, 0, 1, 1], [], []>} : vector<16x128xbf16>, vector<128x128xbf16>, vector<16x128xf32> -> vector<16x128xf32>
    %c0_3 = arith.constant 0 : index
    %c0_4 = arith.constant 0 : index
    %4 = vector.load %arg8[%c0_3, %c0_4] : memref<1x128xf32, #tpu.memory_space<vmem>>, vector<1x128xf32>
    %5 = vector.broadcast %4 : vector<1x128xf32> to vector<16x128xf32>
    %6 = arith.addf %3, %5 : vector<16x128xf32>
    %7 = arith.truncf %6 : vector<16x128xf32> to vector<16x128xbf16>
    %c0_5 = arith.constant 0 : index
    %c0_6 = arith.constant 0 : index
    %8 = vector.load %arg2[%c0_5, %c0_6] : memref<16x128xf32, #tpu.memory_space<vmem>>, vector<16x128xf32>
    %9 = arith.truncf %8 : vector<16x128xf32> to vector<16x128xbf16>
    %c0_7 = arith.constant 0 : index
    %c0_8 = arith.constant 0 : index
    %10 = vector.load %arg5[%c0_7, %c0_8] : memref<128x128xbf16, #tpu.memory_space<vmem>>, vector<128x128xbf16>
    %cst_9 = arith.constant dense<0.000000e+00> : vector<16x128xf32>
    %11 = tpu.matmul %9, %10, %cst_9 {dimension_numbers = #tpu.dot_dimension_numbers<[1], [0], [0], [1], [0, 0, 1, 1], [], []>} : vector<16x128xbf16>, vector<128x128xbf16>, vector<16x128xf32> -> vector<16x128xf32>
    %c0_10 = arith.constant 0 : index
    %c0_11 = arith.constant 0 : index
    %12 = vector.load %arg9[%c0_10, %c0_11] : memref<1x128xf32, #tpu.memory_space<vmem>>, vector<1x128xf32>
    %13 = vector.broadcast %12 : vector<1x128xf32> to vector<16x128xf32>
    %14 = arith.addf %11, %13 : vector<16x128xf32>
    %15 = arith.truncf %14 : vector<16x128xf32> to vector<16x128xbf16>
    %c0_12 = arith.constant 0 : index
    %c0_13 = arith.constant 0 : index
    %16 = vector.load %arg3[%c0_12, %c0_13] : memref<16x128xf32, #tpu.memory_space<vmem>>, vector<16x128xf32>
    %17 = arith.truncf %16 : vector<16x128xf32> to vector<16x128xbf16>
    %c0_14 = arith.constant 0 : index
    %c0_15 = arith.constant 0 : index
    %18 = vector.load %arg6[%c0_14, %c0_15] : memref<128x128xbf16, #tpu.memory_space<vmem>>, vector<128x128xbf16>
    %cst_16 = arith.constant dense<0.000000e+00> : vector<16x128xf32>
    %19 = tpu.matmul %17, %18, %cst_16 {dimension_numbers = #tpu.dot_dimension_numbers<[1], [0], [0], [1], [0, 0, 1, 1], [], []>} : vector<16x128xbf16>, vector<128x128xbf16>, vector<16x128xf32> -> vector<16x128xf32>
    %c0_17 = arith.constant 0 : index
    %c0_18 = arith.constant 0 : index
    %20 = vector.load %arg10[%c0_17, %c0_18] : memref<1x128xf32, #tpu.memory_space<vmem>>, vector<1x128xf32>
    %21 = vector.broadcast %20 : vector<1x128xf32> to vector<16x128xf32>
    %22 = arith.addf %19, %21 : vector<16x128xf32>
    %23 = arith.truncf %22 : vector<16x128xf32> to vector<16x128xbf16>
    %24 = tpu.iota {dimensions = array<i32: 0>} : vector<16x16xi32>
    %c2_i32 = arith.constant 2 : i32
    %c0_i32 = arith.constant 0 : i32
    %25 = arith.cmpi eq, %c2_i32, %c0_i32 : i32
    %c1_i32 = arith.constant 1 : i32
    %26 = arith.select %25, %c1_i32, %c2_i32 : i32
    %27 = vector.broadcast %26 : i32 to vector<16x16xi32>
    %28 = arith.remsi %24, %27 : vector<16x16xi32>
    %c0_i32_19 = arith.constant 0 : i32
    %29 = vector.broadcast %c0_i32_19 : i32 to vector<16x16xi32>
    %30 = arith.cmpi ne, %28, %29 : vector<16x16xi32>
    %c0_i32_20 = arith.constant 0 : i32
    %31 = vector.broadcast %c0_i32_20 : i32 to vector<16x16xi32>
    %32 = arith.cmpi slt, %28, %31 : vector<16x16xi32>
    %c0_i32_21 = arith.constant 0 : i32
    %33 = arith.cmpi slt, %26, %c0_i32_21 : i32
    %34 = vector.broadcast %33 : i1 to vector<16x16xi1>
    %35 = vector.broadcast %34 : vector<16x16xi1> to vector<16x16xi1>
    %36 = arith.xori %32, %35 : vector<16x16xi1>
    %37 = arith.andi %36, %30 : vector<16x16xi1>
    %38 = vector.broadcast %26 : i32 to vector<16x16xi32>
    %39 = arith.addi %28, %38 : vector<16x16xi32>
    %40 = arith.select %37, %39, %28 : vector<16x16xi1>, vector<16x16xi32>
    %41 = tpu.iota {dimensions = array<i32: 1>} : vector<16x16xi32>
    %c2_i32_22 = arith.constant 2 : i32
    %c0_i32_23 = arith.constant 0 : i32
    %42 = arith.cmpi eq, %c2_i32_22, %c0_i32_23 : i32
    %c1_i32_24 = arith.constant 1 : i32
    %43 = arith.select %42, %c1_i32_24, %c2_i32_22 : i32
    %44 = vector.broadcast %43 : i32 to vector<16x16xi32>
    %45 = arith.remsi %41, %44 : vector<16x16xi32>
    %c0_i32_25 = arith.constant 0 : i32
    %46 = vector.broadcast %c0_i32_25 : i32 to vector<16x16xi32>
    %47 = arith.cmpi ne, %45, %46 : vector<16x16xi32>
    %c0_i32_26 = arith.constant 0 : i32
    %48 = vector.broadcast %c0_i32_26 : i32 to vector<16x16xi32>
    %49 = arith.cmpi slt, %45, %48 : vector<16x16xi32>
    %c0_i32_27 = arith.constant 0 : i32
    %50 = arith.cmpi slt, %43, %c0_i32_27 : i32
    %51 = vector.broadcast %50 : i1 to vector<16x16xi1>
    %52 = vector.broadcast %51 : vector<16x16xi1> to vector<16x16xi1>
    %53 = arith.xori %49, %52 : vector<16x16xi1>
    %54 = arith.andi %53, %47 : vector<16x16xi1>
    %55 = vector.broadcast %43 : i32 to vector<16x16xi32>
    %56 = arith.addi %45, %55 : vector<16x16xi32>
    %57 = arith.select %54, %56, %45 : vector<16x16xi1>, vector<16x16xi32>
    %58 = arith.cmpi eq, %40, %57 : vector<16x16xi32>
    %cst_28 = arith.constant 0.000000e+00 : f32
    %cst_29 = arith.constant -1.000000e+30 : f32
    %59 = vector.broadcast %cst_28 : f32 to vector<16x16xf32>
    %60 = vector.broadcast %cst_29 : f32 to vector<16x16xf32>
    %61 = arith.select %58, %59, %60 : vector<16x16xi1>, vector<16x16xf32>
    %62 = vector.extract_strided_slice %7 {offsets = [0, 0], sizes = [16, 16], strides = [1, 1]} : vector<16x128xbf16> to vector<16x16xbf16>
    %63 = vector.extract_strided_slice %15 {offsets = [0, 0], sizes = [16, 16], strides = [1, 1]} : vector<16x128xbf16> to vector<16x16xbf16>
    %64 = vector.extract_strided_slice %23 {offsets = [0, 0], sizes = [16, 16], strides = [1, 1]} : vector<16x128xbf16> to vector<16x16xbf16>
    %cst_30 = arith.constant dense<0.000000e+00> : vector<16x16xf32>
    %65 = tpu.matmul %62, %63, %cst_30 {dimension_numbers = #tpu.dot_dimension_numbers<[1], [1], [0], [0], [0, 0, 1, 0], [], []>} : vector<16x16xbf16>, vector<16x16xbf16>, vector<16x16xf32> -> vector<16x16xf32>
    %66 = arith.addf %65, %61 : vector<16x16xf32>
    %cst_31 = arith.constant dense<0xFF800000> : vector<16xf32>
    %67 = vector.multi_reduction <maximumf>, %66, %cst_31 [1] : vector<16x16xf32> to vector<16xf32>
    %68 = vector.shape_cast %67 : vector<16xf32> to vector<16x1xf32>
    %69 = vector.broadcast %68 : vector<16x1xf32> to vector<16x16xf32>
    %70 = arith.subf %66, %69 : vector<16x16xf32>
    %71 = math.exp %70 : vector<16x16xf32>
    %cst_32 = arith.constant dense<0.000000e+00> : vector<16xf32>
    %72 = vector.multi_reduction <add>, %71, %cst_32 [1] : vector<16x16xf32> to vector<16xf32>
    %73 = vector.shape_cast %72 : vector<16xf32> to vector<16x1xf32>
    %74 = tpu.reciprocal %73 : vector<16x1xf32> -> vector<16x1xf32>
    %75 = vector.broadcast %74 : vector<16x1xf32> to vector<16x16xf32>
    %76 = arith.mulf %71, %75 : vector<16x16xf32>
    %77 = arith.truncf %76 : vector<16x16xf32> to vector<16x16xbf16>
    %cst_33 = arith.constant dense<0.000000e+00> : vector<16x16xf32>
    %78 = tpu.matmul %77, %64, %cst_33 {dimension_numbers = #tpu.dot_dimension_numbers<[1], [0], [0], [1], [0, 0, 1, 1], [], []>} : vector<16x16xbf16>, vector<16x16xbf16>, vector<16x16xf32> -> vector<16x16xf32>
    %79 = arith.truncf %78 : vector<16x16xf32> to vector<16x16xbf16>
    %c0_34 = arith.constant 0 : index
    %c0_35 = arith.constant 0 : index
    %80 = vector.load %arg13[%c0_34, %c0_35] : memref<16x128xbf16, #tpu.memory_space<vmem>>, vector<16x16xbf16>
    tpu.vector_store %arg13[%c0_34, %c0_35], %79 {strides = array<i32>} : memref<16x128xbf16, #tpu.memory_space<vmem>>, vector<16x16xbf16>,
    %81 = vector.extract_strided_slice %7 {offsets = [0, 16], sizes = [16, 16], strides = [1, 1]} : vector<16x128xbf16> to vector<16x16xbf16>
    %82 = vector.extract_strided_slice %15 {offsets = [0, 16], sizes = [16, 16], strides = [1, 1]} : vector<16x128xbf16> to vector<16x16xbf16>
    %83 = vector.extract_strided_slice %23 {offsets = [0, 16], sizes = [16, 16], strides = [1, 1]} : vector<16x128xbf16> to vector<16x16xbf16>
    %cst_36 = arith.constant dense<0.000000e+00> : vector<16x16xf32>
    %84 = tpu.matmul %81, %82, %cst_36 {dimension_numbers = #tpu.dot_dimension_numbers<[1], [1], [0], [0], [0, 0, 1, 0], [], []>} : vector<16x16xbf16>, vector<16x16xbf16>, vector<16x16xf32> -> vector<16x16xf32>
    %85 = arith.addf %84, %61 : vector<16x16xf32>
    %cst_37 = arith.constant dense<0xFF800000> : vector<16xf32>
    %86 = vector.multi_reduction <maximumf>, %85, %cst_37 [1] : vector<16x16xf32> to vector<16xf32>
    %87 = vector.shape_cast %86 : vector<16xf32> to vector<16x1xf32>
    %88 = vector.broadcast %87 : vector<16x1xf32> to vector<16x16xf32>
    %89 = arith.subf %85, %88 : vector<16x16xf32>
    %90 = math.exp %89 : vector<16x16xf32>
    %cst_38 = arith.constant dense<0.000000e+00> : vector<16xf32>
    %91 = vector.multi_reduction <add>, %90, %cst_38 [1] : vector<16x16xf32> to vector<16xf32>
    %92 = vector.shape_cast %91 : vector<16xf32> to vector<16x1xf32>
    %93 = tpu.reciprocal %92 : vector<16x1xf32> -> vector<16x1xf32>
    %94 = vector.broadcast %93 : vector<16x1xf32> to vector<16x16xf32>
    %95 = arith.mulf %90, %94 : vector<16x16xf32>
    %96 = arith.truncf %95 : vector<16x16xf32> to vector<16x16xbf16>
    %cst_39 = arith.constant dense<0.000000e+00> : vector<16x16xf32>
    %97 = tpu.matmul %96, %83, %cst_39 {dimension_numbers = #tpu.dot_dimension_numbers<[1], [0], [0], [1], [0, 0, 1, 1], [], []>} : vector<16x16xbf16>, vector<16x16xbf16>, vector<16x16xf32> -> vector<16x16xf32>
    %98 = arith.truncf %97 : vector<16x16xf32> to vector<16x16xbf16>
    %c0_40 = arith.constant 0 : index
    %c16 = arith.constant 16 : index
    %99 = vector.load %arg13[%c0_40, %c16] : memref<16x128xbf16, #tpu.memory_space<vmem>>, vector<16x16xbf16>
    tpu.vector_store %arg13[%c0_40, %c16], %98 {strides = array<i32>} : memref<16x128xbf16, #tpu.memory_space<vmem>>, vector<16x16xbf16>,
    %100 = vector.extract_strided_slice %7 {offsets = [0, 32], sizes = [16, 16], strides = [1, 1]} : vector<16x128xbf16> to vector<16x16xbf16>
    %101 = vector.extract_strided_slice %15 {offsets = [0, 32], sizes = [16, 16], strides = [1, 1]} : vector<16x128xbf16> to vector<16x16xbf16>
    %102 = vector.extract_strided_slice %23 {offsets = [0, 32], sizes = [16, 16], strides = [1, 1]} : vector<16x128xbf16> to vector<16x16xbf16>
    %cst_41 = arith.constant dense<0.000000e+00> : vector<16x16xf32>
    %103 = tpu.matmul %100, %101, %cst_41 {dimension_numbers = #tpu.dot_dimension_numbers<[1], [1], [0], [0], [0, 0, 1, 0], [], []>} : vector<16x16xbf16>, vector<16x16xbf16>, vector<16x16xf32> -> vector<16x16xf32>
    %104 = arith.addf %103, %61 : vector<16x16xf32>
    %cst_42 = arith.constant dense<0xFF800000> : vector<16xf32>
    %105 = vector.multi_reduction <maximumf>, %104, %cst_42 [1] : vector<16x16xf32> to vector<16xf32>
    %106 = vector.shape_cast %105 : vector<16xf32> to vector<16x1xf32>
    %107 = vector.broadcast %106 : vector<16x1xf32> to vector<16x16xf32>
    %108 = arith.subf %104, %107 : vector<16x16xf32>
    %109 = math.exp %108 : vector<16x16xf32>
    %cst_43 = arith.constant dense<0.000000e+00> : vector<16xf32>
    %110 = vector.multi_reduction <add>, %109, %cst_43 [1] : vector<16x16xf32> to vector<16xf32>
    %111 = vector.shape_cast %110 : vector<16xf32> to vector<16x1xf32>
    %112 = tpu.reciprocal %111 : vector<16x1xf32> -> vector<16x1xf32>
    %113 = vector.broadcast %112 : vector<16x1xf32> to vector<16x16xf32>
    %114 = arith.mulf %109, %113 : vector<16x16xf32>
    %115 = arith.truncf %114 : vector<16x16xf32> to vector<16x16xbf16>
    %cst_44 = arith.constant dense<0.000000e+00> : vector<16x16xf32>
    %116 = tpu.matmul %115, %102, %cst_44 {dimension_numbers = #tpu.dot_dimension_numbers<[1], [0], [0], [1], [0, 0, 1, 1], [], []>} : vector<16x16xbf16>, vector<16x16xbf16>, vector<16x16xf32> -> vector<16x16xf32>
    %117 = arith.truncf %116 : vector<16x16xf32> to vector<16x16xbf16>
    %c0_45 = arith.constant 0 : index
    %c32 = arith.constant 32 : index
    %118 = vector.load %arg13[%c0_45, %c32] : memref<16x128xbf16, #tpu.memory_space<vmem>>, vector<16x16xbf16>
    tpu.vector_store %arg13[%c0_45, %c32], %117 {strides = array<i32>} : memref<16x128xbf16, #tpu.memory_space<vmem>>, vector<16x16xbf16>,
    %119 = vector.extract_strided_slice %7 {offsets = [0, 48], sizes = [16, 16], strides = [1, 1]} : vector<16x128xbf16> to vector<16x16xbf16>
    %120 = vector.extract_strided_slice %15 {offsets = [0, 48], sizes = [16, 16], strides = [1, 1]} : vector<16x128xbf16> to vector<16x16xbf16>
    %121 = vector.extract_strided_slice %23 {offsets = [0, 48], sizes = [16, 16], strides = [1, 1]} : vector<16x128xbf16> to vector<16x16xbf16>
    %cst_46 = arith.constant dense<0.000000e+00> : vector<16x16xf32>
    %122 = tpu.matmul %119, %120, %cst_46 {dimension_numbers = #tpu.dot_dimension_numbers<[1], [1], [0], [0], [0, 0, 1, 0], [], []>} : vector<16x16xbf16>, vector<16x16xbf16>, vector<16x16xf32> -> vector<16x16xf32>
    %123 = arith.addf %122, %61 : vector<16x16xf32>
    %cst_47 = arith.constant dense<0xFF800000> : vector<16xf32>
    %124 = vector.multi_reduction <maximumf>, %123, %cst_47 [1] : vector<16x16xf32> to vector<16xf32>
    %125 = vector.shape_cast %124 : vector<16xf32> to vector<16x1xf32>
    %126 = vector.broadcast %125 : vector<16x1xf32> to vector<16x16xf32>
    %127 = arith.subf %123, %126 : vector<16x16xf32>
    %128 = math.exp %127 : vector<16x16xf32>
    %cst_48 = arith.constant dense<0.000000e+00> : vector<16xf32>
    %129 = vector.multi_reduction <add>, %128, %cst_48 [1] : vector<16x16xf32> to vector<16xf32>
    %130 = vector.shape_cast %129 : vector<16xf32> to vector<16x1xf32>
    %131 = tpu.reciprocal %130 : vector<16x1xf32> -> vector<16x1xf32>
    %132 = vector.broadcast %131 : vector<16x1xf32> to vector<16x16xf32>
    %133 = arith.mulf %128, %132 : vector<16x16xf32>
    %134 = arith.truncf %133 : vector<16x16xf32> to vector<16x16xbf16>
    %cst_49 = arith.constant dense<0.000000e+00> : vector<16x16xf32>
    %135 = tpu.matmul %134, %121, %cst_49 {dimension_numbers = #tpu.dot_dimension_numbers<[1], [0], [0], [1], [0, 0, 1, 1], [], []>} : vector<16x16xbf16>, vector<16x16xbf16>, vector<16x16xf32> -> vector<16x16xf32>
    %136 = arith.truncf %135 : vector<16x16xf32> to vector<16x16xbf16>
    %c0_50 = arith.constant 0 : index
    %c48 = arith.constant 48 : index
    %137 = vector.load %arg13[%c0_50, %c48] : memref<16x128xbf16, #tpu.memory_space<vmem>>, vector<16x16xbf16>
    tpu.vector_store %arg13[%c0_50, %c48], %136 {strides = array<i32>} : memref<16x128xbf16, #tpu.memory_space<vmem>>, vector<16x16xbf16>,
    %138 = vector.extract_strided_slice %7 {offsets = [0, 64], sizes = [16, 16], strides = [1, 1]} : vector<16x128xbf16> to vector<16x16xbf16>
    %139 = vector.extract_strided_slice %15 {offsets = [0, 64], sizes = [16, 16], strides = [1, 1]} : vector<16x128xbf16> to vector<16x16xbf16>
    %140 = vector.extract_strided_slice %23 {offsets = [0, 64], sizes = [16, 16], strides = [1, 1]} : vector<16x128xbf16> to vector<16x16xbf16>
    %cst_51 = arith.constant dense<0.000000e+00> : vector<16x16xf32>
    %141 = tpu.matmul %138, %139, %cst_51 {dimension_numbers = #tpu.dot_dimension_numbers<[1], [1], [0], [0], [0, 0, 1, 0], [], []>} : vector<16x16xbf16>, vector<16x16xbf16>, vector<16x16xf32> -> vector<16x16xf32>
    %142 = arith.addf %141, %61 : vector<16x16xf32>
    %cst_52 = arith.constant dense<0xFF800000> : vector<16xf32>
    %143 = vector.multi_reduction <maximumf>, %142, %cst_52 [1] : vector<16x16xf32> to vector<16xf32>
    %144 = vector.shape_cast %143 : vector<16xf32> to vector<16x1xf32>
    %145 = vector.broadcast %144 : vector<16x1xf32> to vector<16x16xf32>
    %146 = arith.subf %142, %145 : vector<16x16xf32>
    %147 = math.exp %146 : vector<16x16xf32>
    %cst_53 = arith.constant dense<0.000000e+00> : vector<16xf32>
    %148 = vector.multi_reduction <add>, %147, %cst_53 [1] : vector<16x16xf32> to vector<16xf32>
    %149 = vector.shape_cast %148 : vector<16xf32> to vector<16x1xf32>
    %150 = tpu.reciprocal %149 : vector<16x1xf32> -> vector<16x1xf32>
    %151 = vector.broadcast %150 : vector<16x1xf32> to vector<16x16xf32>
    %152 = arith.mulf %147, %151 : vector<16x16xf32>
    %153 = arith.truncf %152 : vector<16x16xf32> to vector<16x16xbf16>
    %cst_54 = arith.constant dense<0.000000e+00> : vector<16x16xf32>
    %154 = tpu.matmul %153, %140, %cst_54 {dimension_numbers = #tpu.dot_dimension_numbers<[1], [0], [0], [1], [0, 0, 1, 1], [], []>} : vector<16x16xbf16>, vector<16x16xbf16>, vector<16x16xf32> -> vector<16x16xf32>
    %155 = arith.truncf %154 : vector<16x16xf32> to vector<16x16xbf16>
    %c0_55 = arith.constant 0 : index
    %c64 = arith.constant 64 : index
    %156 = vector.load %arg13[%c0_55, %c64] : memref<16x128xbf16, #tpu.memory_space<vmem>>, vector<16x16xbf16>
    tpu.vector_store %arg13[%c0_55, %c64], %155 {strides = array<i32>} : memref<16x128xbf16, #tpu.memory_space<vmem>>, vector<16x16xbf16>,
    %157 = vector.extract_strided_slice %7 {offsets = [0, 80], sizes = [16, 16], strides = [1, 1]} : vector<16x128xbf16> to vector<16x16xbf16>
    %158 = vector.extract_strided_slice %15 {offsets = [0, 80], sizes = [16, 16], strides = [1, 1]} : vector<16x128xbf16> to vector<16x16xbf16>
    %159 = vector.extract_strided_slice %23 {offsets = [0, 80], sizes = [16, 16], strides = [1, 1]} : vector<16x128xbf16> to vector<16x16xbf16>
    %cst_56 = arith.constant dense<0.000000e+00> : vector<16x16xf32>
    %160 = tpu.matmul %157, %158, %cst_56 {dimension_numbers = #tpu.dot_dimension_numbers<[1], [1], [0], [0], [0, 0, 1, 0], [], []>} : vector<16x16xbf16>, vector<16x16xbf16>, vector<16x16xf32> -> vector<16x16xf32>
    %161 = arith.addf %160, %61 : vector<16x16xf32>
    %cst_57 = arith.constant dense<0xFF800000> : vector<16xf32>
    %162 = vector.multi_reduction <maximumf>, %161, %cst_57 [1] : vector<16x16xf32> to vector<16xf32>
    %163 = vector.shape_cast %162 : vector<16xf32> to vector<16x1xf32>
    %164 = vector.broadcast %163 : vector<16x1xf32> to vector<16x16xf32>
    %165 = arith.subf %161, %164 : vector<16x16xf32>
    %166 = math.exp %165 : vector<16x16xf32>
    %cst_58 = arith.constant dense<0.000000e+00> : vector<16xf32>
    %167 = vector.multi_reduction <add>, %166, %cst_58 [1] : vector<16x16xf32> to vector<16xf32>
    %168 = vector.shape_cast %167 : vector<16xf32> to vector<16x1xf32>
    %169 = tpu.reciprocal %168 : vector<16x1xf32> -> vector<16x1xf32>
    %170 = vector.broadcast %169 : vector<16x1xf32> to vector<16x16xf32>
    %171 = arith.mulf %166, %170 : vector<16x16xf32>
    %172 = arith.truncf %171 : vector<16x16xf32> to vector<16x16xbf16>
    %cst_59 = arith.constant dense<0.000000e+00> : vector<16x16xf32>
    %173 = tpu.matmul %172, %159, %cst_59 {dimension_numbers = #tpu.dot_dimension_numbers<[1], [0], [0], [1], [0, 0, 1, 1], [], []>} : vector<16x16xbf16>, vector<16x16xbf16>, vector<16x16xf32> -> vector<16x16xf32>
    %174 = arith.truncf %173 : vector<16x16xf32> to vector<16x16xbf16>
    %c0_60 = arith.constant 0 : index
    %c80 = arith.constant 80 : index
    %175 = vector.load %arg13[%c0_60, %c80] : memref<16x128xbf16, #tpu.memory_space<vmem>>, vector<16x16xbf16>
    tpu.vector_store %arg13[%c0_60, %c80], %174 {strides = array<i32>} : memref<16x128xbf16, #tpu.memory_space<vmem>>, vector<16x16xbf16>,
    %176 = vector.extract_strided_slice %7 {offsets = [0, 96], sizes = [16, 16], strides = [1, 1]} : vector<16x128xbf16> to vector<16x16xbf16>
    %177 = vector.extract_strided_slice %15 {offsets = [0, 96], sizes = [16, 16], strides = [1, 1]} : vector<16x128xbf16> to vector<16x16xbf16>
    %178 = vector.extract_strided_slice %23 {offsets = [0, 96], sizes = [16, 16], strides = [1, 1]} : vector<16x128xbf16> to vector<16x16xbf16>
    %cst_61 = arith.constant dense<0.000000e+00> : vector<16x16xf32>
    %179 = tpu.matmul %176, %177, %cst_61 {dimension_numbers = #tpu.dot_dimension_numbers<[1], [1], [0], [0], [0, 0, 1, 0], [], []>} : vector<16x16xbf16>, vector<16x16xbf16>, vector<16x16xf32> -> vector<16x16xf32>
    %180 = arith.addf %179, %61 : vector<16x16xf32>
    %cst_62 = arith.constant dense<0xFF800000> : vector<16xf32>
    %181 = vector.multi_reduction <maximumf>, %180, %cst_62 [1] : vector<16x16xf32> to vector<16xf32>
    %182 = vector.shape_cast %181 : vector<16xf32> to vector<16x1xf32>
    %183 = vector.broadcast %182 : vector<16x1xf32> to vector<16x16xf32>
    %184 = arith.subf %180, %183 : vector<16x16xf32>
    %185 = math.exp %184 : vector<16x16xf32>
    %cst_63 = arith.constant dense<0.000000e+00> : vector<16xf32>
    %186 = vector.multi_reduction <add>, %185, %cst_63 [1] : vector<16x16xf32> to vector<16xf32>
    %187 = vector.shape_cast %186 : vector<16xf32> to vector<16x1xf32>
    %188 = tpu.reciprocal %187 : vector<16x1xf32> -> vector<16x1xf32>
    %189 = vector.broadcast %188 : vector<16x1xf32> to vector<16x16xf32>
    %190 = arith.mulf %185, %189 : vector<16x16xf32>
    %191 = arith.truncf %190 : vector<16x16xf32> to vector<16x16xbf16>
    %cst_64 = arith.constant dense<0.000000e+00> : vector<16x16xf32>
    %192 = tpu.matmul %191, %178, %cst_64 {dimension_numbers = #tpu.dot_dimension_numbers<[1], [0], [0], [1], [0, 0, 1, 1], [], []>} : vector<16x16xbf16>, vector<16x16xbf16>, vector<16x16xf32> -> vector<16x16xf32>
    %193 = arith.truncf %192 : vector<16x16xf32> to vector<16x16xbf16>
    %c0_65 = arith.constant 0 : index
    %c96 = arith.constant 96 : index
    %194 = vector.load %arg13[%c0_65, %c96] : memref<16x128xbf16, #tpu.memory_space<vmem>>, vector<16x16xbf16>
    tpu.vector_store %arg13[%c0_65, %c96], %193 {strides = array<i32>} : memref<16x128xbf16, #tpu.memory_space<vmem>>, vector<16x16xbf16>,
    %195 = vector.extract_strided_slice %7 {offsets = [0, 112], sizes = [16, 16], strides = [1, 1]} : vector<16x128xbf16> to vector<16x16xbf16>
    %196 = vector.extract_strided_slice %15 {offsets = [0, 112], sizes = [16, 16], strides = [1, 1]} : vector<16x128xbf16> to vector<16x16xbf16>
    %197 = vector.extract_strided_slice %23 {offsets = [0, 112], sizes = [16, 16], strides = [1, 1]} : vector<16x128xbf16> to vector<16x16xbf16>
    %cst_66 = arith.constant dense<0.000000e+00> : vector<16x16xf32>
    %198 = tpu.matmul %195, %196, %cst_66 {dimension_numbers = #tpu.dot_dimension_numbers<[1], [1], [0], [0], [0, 0, 1, 0], [], []>} : vector<16x16xbf16>, vector<16x16xbf16>, vector<16x16xf32> -> vector<16x16xf32>
    %199 = arith.addf %198, %61 : vector<16x16xf32>
    %cst_67 = arith.constant dense<0xFF800000> : vector<16xf32>
    %200 = vector.multi_reduction <maximumf>, %199, %cst_67 [1] : vector<16x16xf32> to vector<16xf32>
    %201 = vector.shape_cast %200 : vector<16xf32> to vector<16x1xf32>
    %202 = vector.broadcast %201 : vector<16x1xf32> to vector<16x16xf32>
    %203 = arith.subf %199, %202 : vector<16x16xf32>
    %204 = math.exp %203 : vector<16x16xf32>
    %cst_68 = arith.constant dense<0.000000e+00> : vector<16xf32>
    %205 = vector.multi_reduction <add>, %204, %cst_68 [1] : vector<16x16xf32> to vector<16xf32>
    %206 = vector.shape_cast %205 : vector<16xf32> to vector<16x1xf32>
    %207 = tpu.reciprocal %206 : vector<16x1xf32> -> vector<16x1xf32>
    %208 = vector.broadcast %207 : vector<16x1xf32> to vector<16x16xf32>
    %209 = arith.mulf %204, %208 : vector<16x16xf32>
    %210 = arith.truncf %209 : vector<16x16xf32> to vector<16x16xbf16>
    %cst_69 = arith.constant dense<0.000000e+00> : vector<16x16xf32>
    %211 = tpu.matmul %210, %197, %cst_69 {dimension_numbers = #tpu.dot_dimension_numbers<[1], [0], [0], [1], [0, 0, 1, 1], [], []>} : vector<16x16xbf16>, vector<16x16xbf16>, vector<16x16xf32> -> vector<16x16xf32>
    %212 = arith.truncf %211 : vector<16x16xf32> to vector<16x16xbf16>
    %c0_70 = arith.constant 0 : index
    %c112 = arith.constant 112 : index
    %213 = vector.load %arg13[%c0_70, %c112] : memref<16x128xbf16, #tpu.memory_space<vmem>>, vector<16x16xbf16>
    tpu.vector_store %arg13[%c0_70, %c112], %212 {strides = array<i32>} : memref<16x128xbf16, #tpu.memory_space<vmem>>, vector<16x16xbf16>,
    %c0_71 = arith.constant 0 : index
    %c0_72 = arith.constant 0 : index
    %214 = vector.load %arg13[%c0_71, %c0_72] : memref<16x128xbf16, #tpu.memory_space<vmem>>, vector<16x128xbf16>
    %c0_73 = arith.constant 0 : index
    %c0_74 = arith.constant 0 : index
    %215 = vector.load %arg7[%c0_73, %c0_74] : memref<128x128xbf16, #tpu.memory_space<vmem>>, vector<128x128xbf16>
    %cst_75 = arith.constant dense<0.000000e+00> : vector<16x128xf32>
    %216 = tpu.matmul %214, %215, %cst_75 {dimension_numbers = #tpu.dot_dimension_numbers<[1], [0], [0], [1], [0, 0, 1, 1], [], []>} : vector<16x128xbf16>, vector<128x128xbf16>, vector<16x128xf32> -> vector<16x128xf32>
    %c0_76 = arith.constant 0 : index
    %c0_77 = arith.constant 0 : index
    %217 = vector.load %arg11[%c0_76, %c0_77] : memref<1x128xf32, #tpu.memory_space<vmem>>, vector<1x128xf32>
    %218 = vector.broadcast %217 : vector<1x128xf32> to vector<16x128xf32>
    %219 = arith.addf %216, %218 : vector<16x128xf32>
    %c0_78 = arith.constant 0 : index
    %c0_79 = arith.constant 0 : index
    %220 = vector.load %arg12[%c0_78, %c0_79] : memref<16x128xf32, #tpu.memory_space<vmem>>, vector<16x128xf32>
    tpu.vector_store %arg12[%c0_78, %c0_79], %219 {strides = array<i32>} : memref<16x128xf32, #tpu.memory_space<vmem>>, vector<16x128xf32>,
    return
  }
  func.func @transform_0(%arg0: i32) -> (i32, i32) {
    %c0_i32 = arith.constant 0 : i32
    %c0_i32_0 = arith.constant 0 : i32
    %c0_i32_1 = arith.constant 0 : i32
    return %c0_i32, %c0_i32_0 : i32, i32
  }
  func.func @transform_1(%arg0: i32) -> (i32, i32) {
    %c0_i32 = arith.constant 0 : i32
    %c0_i32_0 = arith.constant 0 : i32
    %c0_i32_1 = arith.constant 0 : i32
    return %c0_i32, %c0_i32_0 : i32, i32
  }
  func.func @transform_2(%arg0: i32) -> (i32, i32) {
    %c0_i32 = arith.constant 0 : i32
    %c0_i32_0 = arith.constant 0 : i32
    %c0_i32_1 = arith.constant 0 : i32
    return %c0_i32, %c0_i32_0 : i32, i32
  }
  func.func @transform_3(%arg0: i32) -> (i32, i32) {
    %c0_i32 = arith.constant 0 : i32
    %c0_i32_0 = arith.constant 0 : i32
    %c0_i32_1 = arith.constant 0 : i32
    return %c0_i32, %c0_i32_0 : i32, i32
  }
  func.func @transform_4(%arg0: i32) -> (i32, i32) {
    %c0_i32 = arith.constant 0 : i32
    %c0_i32_0 = arith.constant 0 : i32
    %c0_i32_1 = arith.constant 0 : i32
    return %c0_i32, %c0_i32_0 : i32, i32
  }
  func.func @transform_5(%arg0: i32) -> (i32, i32) {
    %c0_i32 = arith.constant 0 : i32
    %c0_i32_0 = arith.constant 0 : i32
    %c0_i32_1 = arith.constant 0 : i32
    return %c0_i32, %c0_i32_0 : i32, i32
  }
  func.func @transform_6(%arg0: i32) -> (i32, i32) {
    %c0_i32 = arith.constant 0 : i32
    %c0_i32_0 = arith.constant 0 : i32
    %c0_i32_1 = arith.constant 0 : i32
    return %c0_i32, %c0_i32_0 : i32, i32
  }
  func.func @transform_7(%arg0: i32) -> (i32, i32) {
    %c0_i32 = arith.constant 0 : i32
    %c0_i32_0 = arith.constant 0 : i32
    %c0_i32_1 = arith.constant 0 : i32
    return %c0_i32, %c0_i32_0 : i32, i32
  }
  func.func @transform_8(%arg0: i32) -> (i32, i32) {
    %c0_i32 = arith.constant 0 : i32
    %c0_i32_0 = arith.constant 0 : i32
    %c0_i32_1 = arith.constant 0 : i32
    return %c0_i32, %c0_i32_0 : i32, i32
  }
  func.func @transform_9(%arg0: i32) -> (i32, i32) {
    %c0_i32 = arith.constant 0 : i32
    %c0_i32_0 = arith.constant 0 : i32
    %c0_i32_1 = arith.constant 0 : i32
    return %c0_i32, %c0_i32_0 : i32, i32
  }
  func.func @transform_10(%arg0: i32) -> (i32, i32) {
    %c0_i32 = arith.constant 0 : i32
    %c0_i32_0 = arith.constant 0 : i32
    %c0_i32_1 = arith.constant 0 : i32
    return %c0_i32, %c0_i32_0 : i32, i32
  }
  func.func @transform_11(%arg0: i32) -> (i32, i32) {
    %c0_i32 = arith.constant 0 : i32
    %c0_i32_0 = arith.constant 0 : i32
    %c0_i32_1 = arith.constant 0 : i32
    return %c0_i32, %c0_i32_0 : i32, i32
  }
}

</mosaic_0001>

<bundles_post_ra>
// kernel: multihead_attention.1
= control target key start
LH: loop header
LB: loop body
LE: loop exit
PB: predicated region body
PF: predicated region fallthrough
CT: control target
= control target key end

     0   :  { %s2089_s0 = inlined_call_operand.vmem [shape: f32[16,128], index: 0, kind: input, shape index: {}]   ;;  %s2090_s1 = inlined_call_operand.vmem [shape: f32[16,128], index: 1, kind: input, shape index: {}]   ;;  %s2091_s2 = inlined_call_operand.vmem [shape: f32[16,128], index: 2, kind: input, shape index: {}]   ;;  %s2092_s3 = inlined_call_operand.vmem [shape: bf16[128,128], index: 3, kind: input, shape index: {}]   ;;  %s2093_s4 = inlined_call_operand.vmem [shape: bf16[128,128], index: 4, kind: input, shape index: {}]   ;;  %s2094_s5 = inlined_call_operand.vmem [shape: bf16[128,128], index: 5, kind: input, shape index: {}]   ;;  %s2095_s6 = inlined_call_operand.vmem [shape: bf16[128,128], index: 6, kind: input, shape index: {}]   ;;  %s2096_s7 = inlined_call_operand.vmem [shape: f32[1,128], index: 7, kind: input, shape index: {}]   ;;  %s2097_s8 = inlined_call_operand.vmem [shape: f32[1,128], index: 8, kind: input, shape index: {}]   ;;  %s2098_s9 = inlined_call_operand.vmem [shape: f32[1,128], index: 9, kind: input, shape index: {}]   ;;  %s2099_s10 = inlined_call_operand.vmem [shape: f32[1,128], index: 10, kind: input, shape index: {}]   ;;  %s2100_s11 = inlined_call_operand.hbm [shape: f32[16,128], index: 11, kind: output, shape index: {}]  }
   0x1   :  { %v1461_v0 = vld [vmem:[%s2092_s3 + $0x38] sm:$0xff]  ;;  %v1460_v2 = vld [vmem:[%s2092_s3 + $0x30] sm:$0xff]  ;;  %v1459_v4 = vld [vmem:[%s2092_s3 + $0x28] sm:$0xff] }
   0x2   :  { %v1469_v1 = vld [vmem:[%s2093_s4 + $0x38] sm:$0xff]  ;;  %111 = vmatpush.bf16.msra.mxu0 %v1461_v0  ;;  %v1468_v3 = vld [vmem:[%s2093_s4 + $0x30] sm:$0xff]  ;;  %v1467_v5 = vld [vmem:[%s2093_s4 + $0x28] sm:$0xff] }
   0x3   :  { %198 = vmatpush.bf16.msra.mxu1 %v1469_v1  ;;  %v1477_v6 = vld [vmem:[%s2094_s5 + $0x38] sm:$0xff]  ;;  %v1476_v7 = vld [vmem:[%s2094_s5 + $0x30] sm:$0xff]  ;;  %v1458_v8 = vld [vmem:[%s2092_s3 + $0x20] sm:$0xff] }
   0x4   :  { %285 = vmatpush.bf16.msra.mxu2 %v1477_v6  ;;  %v1466_v9 = vld [vmem:[%s2093_s4 + $0x20] sm:$0xff] }
   0x6   :  { %112 = vmatpush.bf16.msra.mxu0 %v1460_v2 }
   0x7   :  { %199 = vmatpush.bf16.msra.mxu1 %v1468_v3 }
   0xa   :  { %113 = vmatpush.bf16.msra.mxu0 %v1459_v4 }
   0xb   :  { %200 = vmatpush.bf16.msra.mxu1 %v1467_v5 }
   0xc   :  { %16 = vsyncpa [#allocation4], 0  ;;  %286 = vmatpush.bf16.msra.mxu2 %v1476_v7  ;;  %v1475_v10 = vld [vmem:[%s2094_s5 + $0x28] sm:$0xff]  ;;  %v1457_v11 = vld [vmem:[%s2092_s3 + $0x18] sm:$0xff]  ;;  %vm356_vm0 = vcmask 130048   ;;  %s1594_s20 = smov 80   ;;  %v301_v6 = vlaneseq }
   0xd   :  { %v1465_v12 = vld [vmem:[%s2093_s4 + $0x18] sm:$0xff]  ;;  %v1474_v13 = vld [vmem:[%s2094_s5 + $0x20] sm:$0xff]  ;;  %v1456_v14 = vld [vmem:[%s2092_s3 + $0x10] sm:$0xff]  ;;  %s1595_s21 = smov 64   ;;  %s1598_s22 = smov 48   ;;  %vm451_vm11 = vcmask 125952  }
   0xe   :  { %114 = vmatpush.bf16.msra.mxu0 %v1458_v8  ;;  %v1464_v15 = vld [vmem:[%s2093_s4 + $0x10] sm:$0xff]  ;;  %v1473_v16 = vld [vmem:[%s2094_s5 + $0x18] sm:$0xff]  ;;  %v1455_v17 = vld [vmem:[%s2092_s3 + $0x8] sm:$0xff]  ;;  %v302_v8 = vshrl.u32 %v301_v6, 7  ;;  %s1599_s23 = smov 32   ;;  %s1601_s19 = smov 128  }
   0xf   :  { %201 = vmatpush.bf16.msra.mxu1 %v1466_v9  ;;  %v1463_v18 = vld [vmem:[%s2093_s4 + $0x8] sm:$0xff]  ;;  %v1472_v19 = vld [vmem:[%s2094_s5 + $0x10] sm:$0xff]  ;;  %v1454_v20 = vld [vmem:[%s2092_s3] sm:$0xff]  ;;  %v329_v9 = vand.u32 127, %v301_v6 }
  0x10   :  { %287 = vmatpush.bf16.msra.mxu2 %v1475_v10  ;;  %v1462_v21 = vld [vmem:[%s2093_s4] sm:$0xff]  ;;  %v41_v23 = vld [vmem:[%s2089_s0 + $0x8] sm:$0xff] }
  0x11   :  { %v40_v22 = vld [vmem:[%s2089_s0] sm:$0xff]  ;;  %v128_v25 = vld [vmem:[%s2090_s1 + $0x8] sm:$0xff] }
  0x12   :  { %115 = vmatpush.bf16.msra.mxu0 %v1457_v11  ;;  %v127_v24 = vld [vmem:[%s2090_s1] sm:$0xff]  ;;  %v1471_v26 = vld [vmem:[%s2094_s5 + $0x8] sm:$0xff]  ;;  %v42_v27 = vpack.c.bf16 %v41_v23, %v40_v22  ;;  %v308_v11 = vand.u32 1, %v302_v8 }
  0x13   :  { %202 = vmatpush.bf16.msra.mxu1 %v1465_v12  ;;  %v129_v28 = vpack.c.bf16 %v128_v25, %v127_v24  ;;  %v1470_v29 = vld [vmem:[%s2094_s5] sm:$0xff]  ;;  %v215_v31 = vld [vmem:[%s2091_s2 + $0x8] sm:$0xff]  ;;  %v334_v12 = vand.u32 1, %v329_v9 }
  0x14   :  { %288 = vmatpush.bf16.msra.mxu2 %v1474_v13  ;;  %v214_v30 = vld [vmem:[%s2091_s2] sm:$0xff]  ;;  %s1592_s2 = smov 112   ;;  %v303_v13 = vadd.s32 8, %v302_v8 }
  0x15   :  { %v216_v32 = vpack.c.bf16 %v215_v31, %v214_v30  ;;  %v1499_v35 = vld [vmem:[%s2097_s8] ss:$0 sm:$0xff]  ;;  %vm342_vm1 = vcmp.eq.s32.totalorder %v308_v11, %v334_v12  ;;  %s1294_s8 = sshll.u32 %s2100_s11, 4  ;;  %s1295_s8 = int_to_ptr.hbm [resolvable:$true] %s1294_s8 }
  0x16   :  { %116 = vmatpush.bf16.msra.mxu0 %v1456_v14  ;;  %v1498_v37 = vld [vmem:[%s2096_s7] ss:$0 sm:$0xff]  ;;  %s1593_s7 = smov 96   ;;  %v1597_v14 = vmov -1e+30  }
  0x17   :  { %203 = vmatpush.bf16.msra.mxu1 %v1464_v15  ;;  %v1500_v54 = vld [vmem:[%s2098_s9] ss:$0 sm:$0xff]  ;;  %s1596_s9 = smov 16   ;;  %v1794_v15 = vsel %vm342_vm1, 0.0, %v1597_v14 }
  0x18   :  { %289 = vmatpush.bf16.msra.mxu2 %v1473_v16  ;;  %v315_v16 = vand.u32 1, %v303_v13 }
  0x1a   :  { %117 = vmatpush.bf16.msra.mxu0 %v1455_v17  ;;  %vm343_vm2 = vcmp.eq.s32.totalorder %v315_v16, %v334_v12 }
  0x1b   :  { %204 = vmatpush.bf16.msra.mxu1 %v1463_v18 }
  0x1c   :  { %290 = vmatpush.bf16.msra.mxu2 %v1472_v19 }
  0x1e   :  { %118 = vmatpush.bf16.msra.mxu0 %v1454_v20  ;;  %v1798_v20 = vsel %vm343_vm2, 0.0, %v1597_v14 }
  0x1f   :  { %205 = vmatpush.bf16.msra.mxu1 %v1462_v21 }
  0x20   :  { %291 = vmatpush.bf16.msra.mxu2 %v1471_v26 }
  0x21   :  { %119 = vmatmul.bf16.vlgmr.msra.gmra.mxu0 %v42_v27 }
  0x22   :  { %206 = vmatmul.bf16.vlgmr.msra.gmra.mxu1 %v129_v28 }
  0x24   :  { %292 = vmatpush.bf16.msra.mxu2 %v1470_v29 }
  0x27   :  { %293 = vmatmul.bf16.vlgmr.msra.gmra.mxu2 %v216_v32 }
  0x9e   :  { %v120_v33 = vpop.f32.mrf.mxu0 }
  0x9f   :  { %v207_v34 = vpop.f32.mrf.mxu1  ;;  %v121_v42 = vadd.f32 %v1498_v37, %v120_v33 }
  0xa0   :  { %v208_v36 = vadd.f32 %v1499_v35, %v207_v34 }
  0xa1   :  { %v125_v47 = vpack.c.bf16 %v121_v42, %v121_v42 }
  0xa2   :  { %v212_v40 = vpack.c.bf16 %v208_v36, %v208_v36 }
  0xa3   :  { %v348_v51 = vunpack.c.l.b16 %v125_v47 }
  0xa4   :  { %v353_v45 = vunpack.c.l.b16 %v212_v40 }
  0xa6   :  { %v122_v38 = vpop.f32.mrf.mxu0 }
  0xa7   :  { %v209_v39 = vpop.f32.mrf.mxu1  ;;  %v123_v43 = vadd.f32 %v1498_v37, %v122_v38 }
  0xa8   :  { %v210_v41 = vadd.f32 %v1499_v35, %v209_v39 }
  0xa9   :  { %v126_v48 = vpack.c.bf16 %v123_v43, %v123_v43 }
  0xaa   :  { %v213_v44 = vpack.c.bf16 %v210_v41, %v210_v41  ;;  %v294_v55 = vpop.f32.mrf.mxu2 }
  0xab   :  { %v349_v52 = vunpack.c.l.b16 %v126_v48  ;;  %v295_v56 = vadd.f32 %v1500_v54, %v294_v55 }
  0xac   :  { %v354_v46 = vunpack.c.l.b16 %v213_v44 }
  0xad   :  { %v1765_v53 = vpack.c.b16 %v349_v52, %v348_v51  ;;  %v299_v57 = vpack.c.bf16 %v295_v56, %v295_v56 }
  0xae   :  { %v1759_v49 = vpack.c.b16 %v354_v46, %v353_v45 }
  0xaf   :  { %v428_v60 = vunpack.c.l.b16 %v299_v57 }
  0xb0   :  { %456 = vrot.lane.b32.xlu2 %v1759_v49, %s1592_s2  ;;  %v361_v50 = vsel %vm356_vm0, %v1759_v49, 0 }
  0xb1   :  { %370 = vmatpush.bf16.xpose.msra.mxu3 %v361_v50 }
  0xb2   :  { %v296_v58 = vpop.f32.mrf.mxu2 }
  0xb3   :  { %v297_v59 = vadd.f32 %v1500_v54, %v296_v58 }
  0xb5   :  { %v300_v61 = vpack.c.bf16 %v297_v59, %v297_v59 }
  0xb7   :  { %v429_v62 = vunpack.c.l.b16 %v300_v61 }
  0xb8   :  { %454 = vrot.lane.b32.xlu2 %v1765_v53, %s1592_s2  ;;  %1402 = vmatmul.msk.bf16.vlgmr.msra.gmra.mxu3 %vm356_vm0, %v1765_v53 }
  0xb9   :  { %v1778_v63 = vpack.c.b16 %v429_v62, %v428_v60 }
  0xbb   :  { %442 = vmatpush.bf16.msrb.mxu3 %v1778_v63 }
  0xc0   :  { %560 = vrot.lane.b32.xlu2 %v1765_v53, %s1593_s7 }
  0xc8   :  { %666 = vrot.lane.b32.xlu2 %v1765_v53, %s1594_s20 }
  0xd0   :  { %774 = vrot.lane.b32.xlu2 %v1759_v49, %s1595_s21 }
  0xd8   :  { %772 = vrot.lane.b32.xlu2 %v1765_v53, %s1595_s21 }
  0xe0   :  { %1092 = vrot.lane.b32.xlu2 %v1759_v49, %s1596_s9 }
 0x10a   :  { %v457_v0 = vpop.permute.xlu2 %456 }
 0x10b   :  { %v462_v1 = vsel %vm356_vm0, %v457_v0, 0 }
 0x10c   :  { %471 = vmatpush.bf16.xpose.msra.mxu3 %v462_v1 }
 0x112   :  { %v1788_v2 = vpop.permute.xlu2 %454 }
 0x11a   :  { %v561_v3 = vpop.permute.xlu2 %560 }
 0x122   :  { %v1790_v4 = vpop.permute.xlu2 %666 }
 0x12a   :  { %v775_v5 = vpop.permute.xlu2 %774 }
 0x12b   :  { %v780_v7 = vsel %vm356_vm0, %v775_v5, 0 }
 0x12c   :  { %789 = vmatpush.bf16.xpose.msrb.mxu1 %v780_v7 }
 0x132   :  { %v773_v10 = vpop.permute.xlu2 %772 }
 0x133   :  { %1410 = vmatmul.msk.bf16.vlgmr.msrb.gmra.mxu1 %vm356_vm0, %v773_v10 }
 0x13b   :  { %v372_v17 = vpop.f32.mrf.mxu3 }
 0x13c   :  { %v373_v18 = vadd.f32 %v372_v17, %v1794_v15 }
 0x13e   :  { %v377_v19 = vsel %vm356_vm0, %v373_v18, -inf }
 0x13f   :  { %378 = vmax.xlane.f32.xlu0 %v377_v19 }
 0x143   :  { %v374_v21 = vpop.f32.mrf.mxu3 }
 0x144   :  { %v375_v22 = vadd.f32 %v374_v21, %v1798_v20 }
 0x146   :  { %v380_v23 = vsel %vm356_vm0, %v375_v22, -inf }
 0x147   :  { %381 = vmax.xlane.f32.xlu0 %v380_v23 }
 0x15b   :  { %562 = vrot.lane.b32.xlu0 %v1759_v49, %s1593_s7 }
 0x163   :  { %880 = vrot.lane.b32.xlu0 %v1759_v49, %s1598_s22 }
 0x16b   :  { %986 = vrot.lane.b32.xlu0 %v1759_v49, %s1599_s23 }
 0x173   :  { %1090 = vrot.lane.b32.xlu0 %v1765_v53, %s1596_s9 }
 0x1b0   :  { %v791_v39 = vpop.f32.mrf.mxu1 }
 0x1b1   :  { %v792_v19 = vadd.f32 %v791_v39, %v1794_v15 }
 0x1b2   :  { %v379_v24 = vpop.xlane.xlu0 %378 }
 0x1b3   :  { %v383_v25 = vsub.f32 %v373_v18, %v379_v24  ;;  %v796_v21 = vsel %vm356_vm0, %v792_v19, -inf }
 0x1b5   :  { %v385_v26 = vmul.f32 1.442695, %v383_v25 }
 0x1b7   :  { %1502 = vpow2.f32 %v385_v26 }
 0x1b8   :  { %v793_v40 = vpop.f32.mrf.mxu1 }
 0x1b9   :  { %v1822_v41 = vadd.f32 %v793_v40, %v1798_v20 }
 0x1ba   :  { %v382_v27 = vpop.xlane.xlu0 %381 }
 0x1bb   :  { %v384_v28 = vsub.f32 %v375_v22, %v382_v27  ;;  %v799_v42 = vsel %vm356_vm0, %v1822_v41, -inf  ;;  %v1093_v22 = vpop.permute.xlu2 %1092 }
 0x1bd   :  { %v1503_v29 = vpop.eup %1502  ;;  %v387_v30 = vmul.f32 1.442695, %v384_v28 }
 0x1be   :  { %v389_v31 = vsel %vm356_vm0, %v1503_v29, 0.0 }
 0x1bf   :  { %1504 = vpow2.f32 %v387_v30  ;;  %390 = vadd.xlane.f32.xlu1 %v389_v31 }
 0x1c5   :  { %v1505_v32 = vpop.eup %1504 }
 0x1c6   :  { %v392_v33 = vsel %vm356_vm0, %v1505_v32, 0.0 }
 0x1c7   :  { %393 = vadd.xlane.f32.xlu1 %v392_v33 }
 0x1cd   :  { %v563_v34 = vpop.permute.xlu0 %562 }
 0x1ce   :  { %v568_v35 = vsel %vm356_vm0, %v563_v34, 0 }
 0x1cf   :  { %577 = vmatpush.bf16.xpose.msrb.mxu2 %v568_v35 }
 0x1d5   :  { %v881_v36 = vpop.permute.xlu0 %880 }
 0x1d6   :  { %1406 = vmatmul.msk.bf16.vlgmr.msrb.gmra.mxu2 %vm356_vm0, %v561_v3  ;;  %v886_v13 = vsel %vm356_vm0, %v881_v36, 0 }
 0x1dd   :  { %v987_v37 = vpop.permute.xlu0 %986 }
 0x1de   :  { %v992_v38 = vsel %vm356_vm0, %v987_v37, 0 }
 0x1df   :  { %1001 = vmatpush.bf16.xpose.msra.mxu1 %v992_v38 }
 0x1e0   :  { %668 = vrot.lane.b32.xlu1 %v1759_v49, %s1594_s20 }
 0x1e5   :  { %v1091_v23 = vpop.permute.xlu0 %1090 }
 0x1e8   :  { %878 = vrot.lane.b32.xlu1 %v1765_v53, %s1598_s22 }
 0x1f0   :  { %984 = vrot.lane.b32.xlu1 %v1765_v53, %s1599_s23 }
 0x21a   :  { %800 = vmax.xlane.f32.xlu1 %v799_v42 }
 0x232   :  { %v391_v43 = vpop.xlane.xlu1 %390 }
 0x233   :  { %1506 = vrcp.f32 %v391_v43  ;;  %v406_v52 = vand.u32 2147483648, %v391_v43  ;;  %vm400_vm4 = vweird.f32 %v391_v43  ;;  %v404_v53 = vand.u32 2147483647, %v391_v43 }
 0x235   :  { %v407_v59 = vor.u32 1.1754944e-38, %v406_v52  ;;  %vm405_vm7 = vcmp.eq.f32.partialorder %v404_v53, 8.507059e+37 }
 0x239   :  { %v1507_v44 = vpop.eup %1506 }
 0x23a   :  { %v396_v45 = vmul.f32 %v1507_v44, %v391_v43  ;;  %v394_v46 = vpop.xlane.xlu1 %393  ;;  %vm401_vm3 = vweird.f32 %v1507_v44 }
 0x23b   :  { %1508 = vrcp.f32 %v394_v46  ;;  %vm402_vm5 = vmor %vm400_vm4, %vm401_vm3  ;;  %v420_v55 = vand.u32 2147483648, %v394_v46  ;;  %v418_v58 = vand.u32 2147483647, %v394_v46  ;;  %vm414_vm8 = vweird.f32 %v394_v46 }
 0x23c   :  { %v397_v47 = vsub.f32 1.0, %v396_v45 }
 0x23d   :  { %v421_v61 = vor.u32 1.1754944e-38, %v420_v55  ;;  %vm419_vm10 = vcmp.eq.f32.partialorder %v418_v58, 8.507059e+37 }
 0x23e   :  { %v398_v48 = vmul.f32 %v1507_v44, %v397_v47 }
 0x240   :  { %v399_v50 = vadd.f32 %v1507_v44, %v398_v48 }
 0x241   :  { %v1509_v49 = vpop.eup %1508 }
 0x242   :  { %v410_v51 = vmul.f32 %v1509_v49, %v394_v46  ;;  %v403_v56 = vsel %vm402_vm5, %v1507_v44, %v399_v50  ;;  %vm415_vm6 = vweird.f32 %v1509_v49 }
 0x243   :  { %vm416_vm9 = vmor %vm414_vm8, %vm415_vm6  ;;  %v408_v62 = vsel %vm405_vm7, %v407_v59, %v403_v56 }
 0x244   :  { %v411_v54 = vsub.f32 1.0, %v410_v51  ;;  %v423_v3 = vmul.f32 %v1503_v29, %v408_v62 }
 0x246   :  { %v412_v57 = vmul.f32 %v1509_v49, %v411_v54 }
 0x248   :  { %v413_v60 = vadd.f32 %v1509_v49, %v412_v57 }
 0x24a   :  { %v417_v0 = vsel %vm416_vm9, %v1509_v49, %v413_v60 }
 0x24b   :  { %v422_v1 = vsel %vm419_vm10, %v421_v61, %v417_v0 }
 0x24c   :  { %v424_v5 = vmul.f32 %v1505_v32, %v422_v1 }
 0x24e   :  { %v425_v6 = vpack.c.bf16 %v424_v5, %v423_v3 }
 0x250   :  { %1403 = vmatmul.msk.bf16.vlgmr.msrb.gmra.mxu3 %vm356_vm0, %v425_v6 }
 0x252   :  { %v669_v7 = vpop.permute.xlu1 %668 }
 0x253   :  { %v674_v8 = vsel %vm356_vm0, %v669_v7, 0 }
 0x254   :  { %683 = vmatpush.bf16.xpose.msrb.mxu3 %v674_v8 }
 0x259   :  { %v579_v9 = vpop.f32.mrf.mxu2 }
 0x25a   :  { %v580_v10 = vadd.f32 %v579_v9, %v1794_v15  ;;  %v879_v11 = vpop.permute.xlu1 %878 }
 0x25c   :  { %v584_v12 = vsel %vm356_vm0, %v580_v10, -inf }
 0x25d   :  { %585 = vmax.xlane.f32.xlu0 %v584_v12 }
 0x260   :  { %1404 = vmatmul.msk.bf16.vlgmr.msra.gmra.mxu3 %vm356_vm0, %v1788_v2  ;;  %v1098_v2 = vsel %vm356_vm0, %v1093_v22, 0 }
 0x261   :  { %895 = vmatpush.bf16.xpose.msra.mxu3 %v886_v13  ;;  %v581_v14 = vpop.f32.mrf.mxu2 }
 0x262   :  { %v1834_v16 = vadd.f32 %v581_v14, %v1798_v20  ;;  %v985_v17 = vpop.permute.xlu1 %984 }
 0x263   :  { %1414 = vmatmul.msk.bf16.vlgmr.msra.gmra.mxu1 %vm356_vm0, %v985_v17 }
 0x264   :  { %v587_v18 = vsel %vm356_vm0, %v1834_v16, -inf }
 0x265   :  { %588 = vmax.xlane.f32.xlu2 %v587_v18 }
 0x26d   :  { %797 = vmax.xlane.f32.xlu2 %v796_v21 }
 0x270   :  { %1408 = vmatmul.msk.bf16.vlgmr.msrb.gmra.mxu3 %vm356_vm0, %v1790_v4 }
 0x271   :  { %1107 = vmatpush.bf16.xpose.msrb.mxu3 %v1098_v2 }
 0x280   :  { %1412 = vmatmul.msk.bf16.vlgmr.msra.gmra.mxu3 %vm356_vm0, %v879_v11 }
 0x28d   :  { %v801_v32 = vpop.xlane.xlu1 %800 }
 0x28e   :  { %v803_v36 = vsub.f32 %v1822_v41, %v801_v32 }
 0x290   :  { %1416 = vmatmul.msk.bf16.vlgmr.msrb.gmra.mxu3 %vm356_vm0, %v1091_v23  ;;  %v806_v39 = vmul.f32 1.442695, %v803_v36 }
 0x2d0   :  { %v586_v26 = vpop.xlane.xlu0 %585 }
 0x2d1   :  { %v590_v28 = vsub.f32 %v580_v10, %v586_v26 }
 0x2d3   :  { %v444_v24 = vpop.f32.mrf.mxu3  ;;  %v592_v31 = vmul.f32 1.442695, %v590_v28 }
 0x2d4   :  { %v449_v25 = vpack.c.bf16 %v444_v24, %v444_v24 }
 0x2d5   :  { %1510 = vpow2.f32 %v592_v31 }
 0x2d6   :  { %452 = vst.msk [vmem:[#allocation2] sm:$0xf] %vm451_vm11, %v449_v25 }
 0x2d8   :  { %v589_v27 = vpop.xlane.xlu2 %588 }
 0x2d9   :  { %v591_v59 = vsub.f32 %v1834_v16, %v589_v27 }
 0x2db   :  { %v446_v29 = vpop.f32.mrf.mxu3  ;;  %v1849_v40 = vpop.eup %1510  ;;  %v594_v60 = vmul.f32 1.442695, %v591_v59 }
 0x2dc   :  { %v450_v30 = vpack.c.bf16 %v446_v29, %v446_v29  ;;  %v596_v41 = vsel %vm356_vm0, %v1849_v40, 0.0 }
 0x2de   :  { %453 = vst.msk [vmem:[#allocation2 + $0x4] sm:$0xf] %vm451_vm11, %v450_v30 }
 0x2e0   :  { %v798_v33 = vpop.xlane.xlu2 %797  ;;  %v1003_v4 = vpop.f32.mrf.mxu1 }
 0x2e1   :  { %v802_v34 = vsub.f32 %v792_v19, %v798_v33  ;;  %v1004_v35 = vadd.f32 %v1003_v4, %v1794_v15 }
 0x2e3   :  { %v804_v37 = vmul.f32 1.442695, %v802_v34  ;;  %v1008_v38 = vsel %vm356_vm0, %v1004_v35, -inf  ;;  %v473_v42 = vpop.f32.mrf.mxu3 }
 0x2e4   :  { %1009 = vmax.xlane.f32.xlu1 %v1008_v38  ;;  %v474_v49 = vadd.f32 %v473_v42, %v1794_v15 }
 0x2e5   :  { %1512 = vpow2.f32 %v804_v37 }
 0x2e6   :  { %1514 = vpow2.f32 %v806_v39  ;;  %v478_v52 = vsel %vm356_vm0, %v474_v49, -inf }
 0x2e7   :  { %1516 = vpow2.f32 %v594_v60 }
 0x2e8   :  { %v1005_v43 = vpop.f32.mrf.mxu1 }
 0x2e9   :  { %v1006_v44 = vadd.f32 %v1005_v43, %v1798_v20 }
 0x2eb   :  { %v1852_v45 = vpop.eup %1512  ;;  %v1011_v46 = vsel %vm356_vm0, %v1006_v44, -inf  ;;  %v475_v50 = vpop.f32.mrf.mxu3 }
 0x2ec   :  { %1012 = vmax.xlane.f32.xlu0 %v1011_v46  ;;  %597 = vadd.xlane.f32.xlu1 %v596_v41  ;;  %v808_v47 = vsel %vm356_vm0, %v1852_v45, 0.0  ;;  %v1859_v48 = vpop.eup %1514  ;;  %v1866_v53 = vadd.f32 %v475_v50, %v1798_v20 }
 0x2ed   :  { %809 = vadd.xlane.f32.xlu2 %v808_v47  ;;  %v811_v51 = vsel %vm356_vm0, %v1859_v48, 0.0  ;;  %v1882_v62 = vpop.eup %1516 }
 0x2ee   :  { %v481_v54 = vsel %vm356_vm0, %v1866_v53, -inf  ;;  %v599_v0 = vsel %vm356_vm0, %v1882_v62, 0.0 }
 0x2f3   :  { %v685_v55 = vpop.f32.mrf.mxu3 }
 0x2f4   :  { %812 = vadd.xlane.f32.xlu1 %v811_v51  ;;  %v1871_v56 = vadd.f32 %v685_v55, %v1794_v15 }
 0x2f5   :  { %479 = vmax.xlane.f32.xlu2 %v478_v52 }
 0x2f6   :  { %v690_v57 = vsel %vm356_vm0, %v1871_v56, -inf }
 0x2fb   :  { %v687_v58 = vpop.f32.mrf.mxu3 }
 0x2fc   :  { %482 = vmax.xlane.f32.xlu1 %v481_v54  ;;  %v1887_v3 = vadd.f32 %v687_v58, %v1798_v20 }
 0x2fe   :  { %v693_v5 = vsel %vm356_vm0, %v1887_v3, -inf }
 0x300   :  { %527 = vrot.lane.b32.xlu0 %v1778_v63, %s1592_s2 }
 0x303   :  { %v897_v61 = vpop.f32.mrf.mxu3 }
 0x304   :  { %691 = vmax.xlane.f32.xlu1 %v690_v57  ;;  %v1892_v6 = vadd.f32 %v897_v61, %v1794_v15 }
 0x306   :  { %v902_v8 = vsel %vm356_vm0, %v1892_v6, -inf }
 0x30b   :  { %v899_v1 = vpop.f32.mrf.mxu3 }
 0x30c   :  { %v1908_v24 = vadd.f32 %v899_v1, %v1798_v20 }
 0x30d   :  { %633 = vrot.lane.b32.xlu2 %v1778_v63, %s1593_s7 }
 0x30e   :  { %v905_v32 = vsel %vm356_vm0, %v1908_v24, -inf }
 0x313   :  { %v1109_v7 = vpop.f32.mrf.mxu3 }
 0x314   :  { %v1917_v34 = vadd.f32 %v1109_v7, %v1794_v15 }
 0x31b   :  { %v1111_v9 = vpop.f32.mrf.mxu3 }
 0x31c   :  { %v1897_v10 = vadd.f32 %v1111_v9, %v1798_v20 }
 0x31d   :  { %739 = vrot.lane.b32.xlu1 %v1778_v63, %s1594_s20 }
 0x31e   :  { %v1117_v11 = vsel %vm356_vm0, %v1897_v10, -inf }
 0x32a   :  { %600 = vadd.xlane.f32.xlu0 %v599_v0 }
 0x332   :  { %694 = vmax.xlane.f32.xlu0 %v693_v5 }
 0x33a   :  { %903 = vmax.xlane.f32.xlu0 %v902_v8 }
 0x347   :  { %1118 = vmax.xlane.f32.xlu1 %v1117_v11 }
 0x357   :  { %v1010_v12 = vpop.xlane.xlu1 %1009 }
 0x358   :  { %v1014_v13 = vsub.f32 %v1004_v35, %v1010_v12 }
 0x35a   :  { %v1016_v14 = vmul.f32 1.442695, %v1014_v13 }
 0x35c   :  { %1518 = vpow2.f32 %v1016_v14 }
 0x35f   :  { %v1901_v16 = vpop.xlane.xlu1 %597  ;;  %v1013_v17 = vpop.xlane.xlu0 %1012 }
 0x360   :  { %v810_v18 = vpop.xlane.xlu2 %809  ;;  %v1015_v19 = vsub.f32 %v1006_v44, %v1013_v17  ;;  %vm607_vm6 = vweird.f32 %v1901_v16 }
 0x361   :  { %1520 = vrcp.f32 %v810_v18  ;;  %v825_v38 = vand.u32 2147483648, %v810_v18  ;;  %vm819_vm13 = vweird.f32 %v810_v18  ;;  %v823_v43 = vand.u32 2147483647, %v810_v18 }
 0x362   :  { %v1903_v21 = vpop.eup %1518  ;;  %v1018_v22 = vmul.f32 1.442695, %v1015_v19 }
 0x363   :  { %v1020_v2 = vsel %vm356_vm0, %v1903_v21, 0.0  ;;  %v826_v54 = vor.u32 1.1754944e-38, %v825_v38  ;;  %vm824_vm1 = vcmp.eq.f32.partialorder %v823_v43, 8.507059e+37 }
 0x364   :  { %1021 = vadd.xlane.f32.xlu2 %v1020_v2  ;;  %1522 = vpow2.f32 %v1018_v22 }
 0x367   :  { %v1521_v23 = vpop.eup %1520  ;;  %v813_v25 = vpop.xlane.xlu1 %812 }
 0x368   :  { %v815_v26 = vmul.f32 %v1521_v23, %v810_v18  ;;  %1524 = vrcp.f32 %v813_v25  ;;  %v480_v27 = vpop.xlane.xlu2 %479  ;;  %vm820_vm12 = vweird.f32 %v1521_v23  ;;  %v839_v41 = vand.u32 2147483648, %v813_v25 }
 0x369   :  { %v484_v28 = vsub.f32 %v474_v49, %v480_v27  ;;  %vm1920_vm14 = vmor %vm819_vm13, %vm820_vm12  ;;  %v1114_v49 = vsel %vm356_vm0, %v1917_v34, -inf  ;;  %vm833_vm2 = vweird.f32 %v813_v25 }
 0x36a   :  { %v816_v29 = vsub.f32 1.0, %v815_v26  ;;  %v1910_v30 = vpop.eup %1522  ;;  %v840_v59 = vor.u32 1.1754944e-38, %v839_v41  ;;  %v613_v26 = vand.u32 2147483648, %v1901_v16 }
 0x36b   :  { %v486_v31 = vmul.f32 1.442695, %v484_v28  ;;  %v1023_v4 = vsel %vm356_vm0, %v1910_v30, 0.0  ;;  %v611_v28 = vand.u32 2147483647, %v1901_v16 }
 0x36c   :  { %v817_v33 = vmul.f32 %v1521_v23, %v816_v29  ;;  %906 = vmax.xlane.f32.xlu2 %v905_v32  ;;  %1024 = vadd.xlane.f32.xlu1 %v1023_v4 }
 0x36d   :  { %1526 = vpow2.f32 %v486_v31  ;;  %vm612_vm9 = vcmp.eq.f32.partialorder %v611_v28, 8.507059e+37 }
 0x36e   :  { %v1525_v20 = vpop.eup %1524  ;;  %v818_v35 = vadd.f32 %v1521_v23, %v817_v33 }
 0x36f   :  { %v829_v36 = vmul.f32 %v1525_v20, %v813_v25  ;;  %v483_v37 = vpop.xlane.xlu1 %482  ;;  %vm834_vm15 = vweird.f32 %v1525_v20 }
 0x370   :  { %v485_v39 = vsub.f32 %v1866_v53, %v483_v37  ;;  %v634_v42 = vpop.permute.xlu2 %633  ;;  %v822_v51 = vsel %vm1920_vm14, %v1521_v23, %v818_v35  ;;  %v837_v53 = vand.u32 2147483647, %v813_v25  ;;  %vm835_vm3 = vmor %vm833_vm2, %vm834_vm15  ;;  %v614_v35 = vor.u32 1.1754944e-38, %v613_v26 }
 0x371   :  { %v830_v44 = vsub.f32 1.0, %v829_v36  ;;  %646 = vmatpush.bf16.msra.mxu2 %v634_v42  ;;  %v827_v58 = vsel %vm824_vm1, %v826_v54, %v822_v51 }
 0x372   :  { %v488_v47 = vmul.f32 1.442695, %v485_v39  ;;  %v528_v15 = vpop.permute.xlu0 %527  ;;  %vm838_vm4 = vcmp.eq.f32.partialorder %v837_v53, 8.507059e+37  ;;  %v1934_v5 = vmul.f32 %v1852_v45, %v827_v58 }
 0x373   :  { %v1926_v50 = vpop.eup %1526  ;;  %v831_v52 = vmul.f32 %v1525_v20, %v830_v44  ;;  %540 = vmatpush.bf16.msrb.mxu0 %v528_v15 }
 0x374   :  { %1528 = vpow2.f32 %v488_v47  ;;  %1115 = vmax.xlane.f32.xlu2 %v1114_v49  ;;  %v490_v55 = vsel %vm356_vm0, %v1926_v50, 0.0 }
 0x375   :  { %v832_v57 = vadd.f32 %v1525_v20, %v831_v52  ;;  %491 = vadd.xlane.f32.xlu0 %v490_v55 }
 0x377   :  { %v836_v60 = vsel %vm835_vm3, %v1525_v20, %v832_v57  ;;  %v692_v61 = vpop.xlane.xlu1 %691 }
 0x378   :  { %v841_v0 = vsel %vm838_vm4, %v840_v59, %v836_v60  ;;  %v696_v1 = vsub.f32 %v1871_v56, %v692_v61 }
 0x379   :  { %v1937_v7 = vmul.f32 %v1859_v48, %v841_v0 }
 0x37a   :  { %v1939_v8 = vpop.eup %1528  ;;  %v698_v9 = vmul.f32 1.442695, %v696_v1 }
 0x37b   :  { %v493_v11 = vsel %vm356_vm0, %v1939_v8, 0.0  ;;  %v844_v12 = vpack.c.bf16 %v1937_v7, %v1934_v5 }
 0x37c   :  { %1530 = vpow2.f32 %v698_v9  ;;  %494 = vadd.xlane.f32.xlu2 %v493_v11 }
 0x37d   :  { %1532 = vrcp.f32 %v1901_v16 }
 0x382   :  { %v1945_v13 = vpop.eup %1530 }
 0x383   :  { %v702_v45 = vsel %vm356_vm0, %v1945_v13, 0.0  ;;  %v1533_v48 = vpop.eup %1532 }
 0x384   :  { %703 = vadd.xlane.f32.xlu2 %v702_v45  ;;  %v603_v14 = vmul.f32 %v1533_v48, %v1901_v16  ;;  %vm608_vm5 = vweird.f32 %v1533_v48 }
 0x385   :  { %vm609_vm7 = vmor %vm607_vm6, %vm608_vm5 }
 0x386   :  { %v604_v17 = vsub.f32 1.0, %v603_v14 }
 0x388   :  { %v605_v19 = vmul.f32 %v1533_v48, %v604_v17 }
 0x38a   :  { %v606_v2 = vadd.f32 %v1533_v48, %v605_v19 }
 0x38c   :  { %v610_v33 = vsel %vm609_vm7, %v1533_v48, %v606_v2 }
 0x38d   :  { %v615_v37 = vsel %vm612_vm9, %v614_v35, %v610_v33 }
 0x38e   :  { %v630_v43 = vmul.f32 %v1849_v40, %v615_v37 }
 0x38f   :  { %v740_v56 = vpop.permute.xlu1 %739 }
 0x390   :  { %752 = vmatpush.bf16.msra.mxu0 %v740_v56 }
 0x39d   :  { %v601_v18 = vpop.xlane.xlu0 %600 }
 0x39e   :  { %1534 = vrcp.f32 %v601_v18  ;;  %v627_v31 = vand.u32 2147483648, %v601_v18  ;;  %v625_v20 = vand.u32 2147483647, %v601_v18  ;;  %vm621_vm10 = vweird.f32 %v601_v18 }
 0x3a0   :  { %vm626_vm12 = vcmp.eq.f32.partialorder %v625_v20, 8.507059e+37 }
 0x3a4   :  { %v1535_v22 = vpop.eup %1534 }
 0x3a5   :  { %v617_v23 = vmul.f32 %v1535_v22, %v601_v18  ;;  %v695_v25 = vpop.xlane.xlu0 %694  ;;  %vm622_vm8 = vweird.f32 %v1535_v22 }
 0x3a6   :  { %v697_v27 = vsub.f32 %v1887_v3, %v695_v25  ;;  %vm623_vm11 = vmor %vm621_vm10, %vm622_vm8  ;;  %v628_v3 = vor.u32 1.1754944e-38, %v627_v31 }
 0x3a7   :  { %v618_v29 = vsub.f32 1.0, %v617_v23 }
 0x3a8   :  { %v700_v32 = vmul.f32 1.442695, %v697_v27 }
 0x3a9   :  { %v619_v4 = vmul.f32 %v1535_v22, %v618_v29 }
 0x3aa   :  { %1536 = vpow2.f32 %v700_v32 }
 0x3ab   :  { %v620_v36 = vadd.f32 %v1535_v22, %v619_v4 }
 0x3ad   :  { %v624_v38 = vsel %vm623_vm11, %v1535_v22, %v620_v36  ;;  %v904_v39 = vpop.xlane.xlu0 %903 }
 0x3ae   :  { %v629_v16 = vsel %vm626_vm12, %v628_v3, %v624_v38  ;;  %v908_v42 = vsub.f32 %v1892_v6, %v904_v39 }
 0x3af   :  { %v631_v44 = vmul.f32 %v1882_v62, %v629_v16 }
 0x3b0   :  { %v1958_v46 = vpop.eup %1536  ;;  %v910_v41 = vmul.f32 1.442695, %v908_v42 }
 0x3b1   :  { %v705_v47 = vsel %vm356_vm0, %v1958_v46, 0.0  ;;  %v632_v15 = vpack.c.bf16 %v631_v44, %v630_v43 }
 0x3b2   :  { %1538 = vpow2.f32 %v910_v41  ;;  %706 = vadd.xlane.f32.xlu1 %v705_v47 }
 0x3b3   :  { %1407 = vmatmul.msk.bf16.vlgmr.msra.gmra.mxu2 %vm356_vm0, %v632_v15 }
 0x3b8   :  { %v1963_v49 = vpop.eup %1538 }
 0x3b9   :  { %v914_v6 = vsel %vm356_vm0, %v1963_v49, 0.0 }
 0x3ba   :  { %915 = vadd.xlane.f32.xlu1 %v914_v6  ;;  %v1119_v4 = vpop.xlane.xlu1 %1118 }
 0x3bb   :  { %v1121_v35 = vsub.f32 %v1897_v10, %v1119_v4 }
 0x3bd   :  { %v1124_v36 = vmul.f32 1.442695, %v1121_v35 }
 0x3d3   :  { %1057 = vrot.lane.b32.xlu1 %v1778_v63, %s1599_s23 }
 0x3d7   :  { %v1969_v40 = vpop.xlane.xlu2 %1021 }
 0x3df   :  { %v907_v62 = vpop.xlane.xlu2 %906  ;;  %v1991_v37 = vpop.xlane.xlu1 %1024 }
 0x3e0   :  { %v909_v51 = vsub.f32 %v1908_v24, %v907_v62 }
 0x3e2   :  { %v912_v52 = vmul.f32 1.442695, %v909_v51 }
 0x3e4   :  { %1540 = vpow2.f32 %v912_v52 }
 0x3e7   :  { %v1116_v53 = vpop.xlane.xlu2 %1115 }
 0x3e8   :  { %v1120_v54 = vsub.f32 %v1917_v34, %v1116_v53  ;;  %v492_v55 = vpop.xlane.xlu0 %491 }
 0x3e9   :  { %1542 = vrcp.f32 %v492_v55  ;;  %v507_v48 = vand.u32 2147483648, %v492_v55  ;;  %vm501_vm14 = vweird.f32 %v492_v55  ;;  %v505_v14 = vand.u32 2147483647, %v492_v55 }
 0x3ea   :  { %v1973_v57 = vpop.eup %1540  ;;  %v1122_v58 = vmul.f32 1.442695, %v1120_v54 }
 0x3eb   :  { %v917_v59 = vsel %vm356_vm0, %v1973_v57, 0.0  ;;  %v508_v23 = vor.u32 1.1754944e-38, %v507_v48  ;;  %vm506_vm2 = vcmp.eq.f32.partialorder %v505_v14, 8.507059e+37 }
 0x3ec   :  { %1544 = vpow2.f32 %v1122_v58  ;;  %918 = vadd.xlane.f32.xlu0 %v917_v59 }
 0x3ef   :  { %v1543_v60 = vpop.eup %1542  ;;  %v495_v61 = vpop.xlane.xlu2 %494 }
 0x3f0   :  { %v497_v0 = vmul.f32 %v1543_v60, %v492_v55  ;;  %1546 = vrcp.f32 %v495_v61  ;;  %vm502_vm13 = vweird.f32 %v1543_v60  ;;  %v521_v18 = vand.u32 2147483648, %v495_v61 }
 0x3f1   :  { %vm503_vm15 = vmor %vm501_vm14, %vm502_vm13  ;;  %v519_v2 = vand.u32 2147483647, %v495_v61  ;;  %vm515_vm3 = vweird.f32 %v495_v61 }
 0x3f2   :  { %v1977_v24 = vpop.eup %1544  ;;  %v498_v1 = vsub.f32 1.0, %v497_v0  ;;  %v522_v26 = vor.u32 1.1754944e-38, %v521_v18 }
 0x3f3   :  { %v1126_v34 = vsel %vm356_vm0, %v1977_v24, 0.0  ;;  %vm520_vm5 = vcmp.eq.f32.partialorder %v519_v2, 8.507059e+37 }
 0x3f4   :  { %v499_v9 = vmul.f32 %v1543_v60, %v498_v1  ;;  %1127 = vadd.xlane.f32.xlu2 %v1126_v34 }
 0x3f6   :  { %v1547_v11 = vpop.eup %1546  ;;  %v500_v45 = vadd.f32 %v1543_v60, %v499_v9 }
 0x3f7   :  { %v511_v56 = vmul.f32 %v1547_v11, %v495_v61  ;;  %vm516_vm1 = vweird.f32 %v1547_v11  ;;  %v704_v20 = vpop.xlane.xlu2 %703 }
 0x3f8   :  { %v504_v19 = vsel %vm503_vm15, %v1543_v60, %v500_v45  ;;  %vm517_vm4 = vmor %vm515_vm3, %vm516_vm1  ;;  %1548 = vrcp.f32 %v704_v20  ;;  %v719_v44 = vand.u32 2147483648, %v704_v20  ;;  %vm713_vm7 = vweird.f32 %v704_v20 }
 0x3f9   :  { %v512_v17 = vsub.f32 1.0, %v511_v56  ;;  %v509_v27 = vsel %vm506_vm2, %v508_v23, %v504_v19  ;;  %1550 = vpow2.f32 %v1124_v36  ;;  %v717_v41 = vand.u32 2147483647, %v704_v20 }
 0x3fa   :  { %v524_v31 = vmul.f32 %v1926_v50, %v509_v27  ;;  %v720_v52 = vor.u32 1.1754944e-38, %v719_v44 }
 0x3fb   :  { %v513_v22 = vmul.f32 %v1547_v11, %v512_v17  ;;  %vm718_vm10 = vcmp.eq.f32.partialorder %v717_v41, 8.507059e+37 }
 0x3fd   :  { %v514_v25 = vadd.f32 %v1547_v11, %v513_v22 }
 0x3fe   :  { %v1549_v50 = vpop.eup %1548 }
 0x3ff   :  { %v518_v28 = vsel %vm517_vm4, %v1547_v11, %v514_v25  ;;  %v1993_v39 = vpop.eup %1550  ;;  %vm714_vm6 = vweird.f32 %v1549_v50 }
 0x400   :  { %845 = vrot.lane.b32.xlu0 %v1778_v63, %s1595_s21  ;;  %v523_v29 = vsel %vm520_vm5, %v522_v26, %v518_v28  ;;  %vm715_vm8 = vmor %vm713_vm7, %vm714_vm6 }
 0x401   :  { %v525_v32 = vmul.f32 %v1939_v8, %v523_v29  ;;  %v709_v8 = vmul.f32 %v1549_v50, %v704_v20 }
 0x403   :  { %v526_v33 = vpack.c.bf16 %v525_v32, %v524_v31  ;;  %v710_v3 = vsub.f32 1.0, %v709_v8 }
 0x405   :  { %1405 = vmatmul.msk.bf16.vlgmr.msrb.gmra.mxu0 %vm356_vm0, %v526_v33  ;;  %v711_v16 = vmul.f32 %v1549_v50, %v710_v3 }
 0x407   :  { %v712_v43 = vadd.f32 %v1549_v50, %v711_v16 }
 0x409   :  { %v716_v6 = vsel %vm715_vm8, %v1549_v50, %v712_v43 }
 0x40a   :  { %v721_v54 = vsel %vm718_vm10, %v720_v52, %v716_v6  ;;  %v1037_v52 = vand.u32 2147483648, %v1969_v40 }
 0x40b   :  { %v736_v61 = vmul.f32 %v1945_v13, %v721_v54 }
 0x40c   :  { %951 = vrot.lane.b32.xlu2 %v1778_v63, %s1598_s22  ;;  %v1038_v54 = vor.u32 1.1754944e-38, %v1037_v52  ;;  %v1485_v52 = vld [vmem:[%s2095_s6 + $0x30] sm:$0xff] }
 0x414   :  { %1163 = vrot.lane.b32.xlu2 %v1778_v63, %s1596_s9  ;;  %v1129_v63 = vsel %vm356_vm0, %v1993_v39, 0.0 }
 0x425   :  { %v707_v38 = vpop.xlane.xlu1 %706 }
 0x426   :  { %1552 = vrcp.f32 %v707_v38  ;;  %v733_v15 = vand.u32 2147483648, %v707_v38  ;;  %v731_v51 = vand.u32 2147483647, %v707_v38  ;;  %vm727_vm11 = vweird.f32 %v707_v38 }
 0x428   :  { %v734_v55 = vor.u32 1.1754944e-38, %v733_v15  ;;  %vm732_vm13 = vcmp.eq.f32.partialorder %v731_v51, 8.507059e+37  ;;  %v1049_v51 = vand.u32 2147483647, %v1991_v37 }
 0x42a   :  { %1130 = vadd.xlane.f32.xlu0 %v1129_v63 }
 0x42c   :  { %v1553_v42 = vpop.eup %1552 }
 0x42d   :  { %v723_v10 = vmul.f32 %v1553_v42, %v707_v38  ;;  %vm728_vm9 = vweird.f32 %v1553_v42  ;;  %v916_v45 = vpop.xlane.xlu1 %915 }
 0x42e   :  { %vm729_vm12 = vmor %vm727_vm11, %vm728_vm9  ;;  %1554 = vrcp.f32 %v916_v45  ;;  %v931_v23 = vand.u32 2147483648, %v916_v45  ;;  %vm925_vm15 = vweird.f32 %v916_v45  ;;  %v929_v26 = vand.u32 2147483647, %v916_v45 }
 0x42f   :  { %v724_v47 = vsub.f32 1.0, %v723_v10  ;;  %vm1045_vm9 = vweird.f32 %v1991_v37  ;;  %vm1031_vm11 = vweird.f32 %v1969_v40 }
 0x430   :  { %v932_v20 = vor.u32 1.1754944e-38, %v931_v23  ;;  %vm930_vm3 = vcmp.eq.f32.partialorder %v929_v26, 8.507059e+37 }
 0x431   :  { %v725_v62 = vmul.f32 %v1553_v42, %v724_v47 }
 0x433   :  { %v726_v53 = vadd.f32 %v1553_v42, %v725_v62 }
 0x434   :  { %v1555_v56 = vpop.eup %1554 }
 0x435   :  { %v730_v58 = vsel %vm729_vm12, %v1553_v42, %v726_v53  ;;  %v921_v48 = vmul.f32 %v1555_v56, %v916_v45  ;;  %vm926_vm14 = vweird.f32 %v1555_v56  ;;  %v1035_v53 = vand.u32 2147483647, %v1969_v40 }
 0x436   :  { %v735_v59 = vsel %vm732_vm13, %v734_v55, %v730_v58  ;;  %v648_v60 = vpop.f32.mrf.mxu2  ;;  %vm927_vm1 = vmor %vm925_vm15, %vm926_vm14  ;;  %vm1050_vm13 = vcmp.eq.f32.partialorder %v1049_v51, 8.507059e+37  ;;  %v1486_v51 = vld [vmem:[%s2095_s6 + $0x38] sm:$0xff] }
 0x437   :  { %v737_v0 = vmul.f32 %v1958_v46, %v735_v59  ;;  %v653_v1 = vpack.c.bf16 %v648_v60, %v648_v60  ;;  %v922_v14 = vsub.f32 1.0, %v921_v48  ;;  %vm1036_vm14 = vcmp.eq.f32.partialorder %v1035_v53, 8.507059e+37  ;;  %1272 = vmatpush.bf16.msrb.mxu1 %v1486_v51 }
 0x439   :  { %657 = vrot.lane.b32.xlu1 %v653_v1, %s1599_s23  ;;  %v738_v34 = vpack.c.bf16 %v737_v0, %v736_v61  ;;  %v923_v13 = vmul.f32 %v1555_v56, %v922_v14 }
 0x43b   :  { %1409 = vmatmul.msk.bf16.vlgmr.msra.gmra.mxu0 %vm356_vm0, %v738_v34  ;;  %v924_v19 = vadd.f32 %v1555_v56, %v923_v13  ;;  %1273 = vmatpush.bf16.msrb.mxu1 %v1485_v52 }
 0x43d   :  { %v928_v31 = vsel %vm927_vm1, %v1555_v56, %v924_v19 }
 0x43e   :  { %v650_v9 = vpop.f32.mrf.mxu2  ;;  %v933_v50 = vsel %vm930_vm3, %v932_v20, %v928_v31 }
 0x43f   :  { %v654_v11 = vpack.c.bf16 %v650_v9, %v650_v9  ;;  %v948_v42 = vmul.f32 %v1963_v49, %v933_v50  ;;  %v1051_v49 = vand.u32 2147483648, %v1991_v37 }
 0x441   :  { %659 = vrot.lane.b32.xlu0 %v654_v11, %s1599_s23  ;;  %v1052_v7 = vor.u32 1.1754944e-38, %v1051_v49 }
 0x445   :  { %v1058_v41 = vpop.permute.xlu1 %1057 }
 0x45f   :  { %v919_v17 = vpop.xlane.xlu0 %918 }
 0x460   :  { %1556 = vrcp.f32 %v919_v17  ;;  %v945_v29 = vand.u32 2147483648, %v919_v17  ;;  %v943_v33 = vand.u32 2147483647, %v919_v17  ;;  %vm939_vm4 = vweird.f32 %v919_v17 }
 0x461   :  { %1558 = vrcp.f32 %v1991_v37 }
 0x462   :  { %1560 = vrcp.f32 %v1969_v40  ;;  %v946_v8 = vor.u32 1.1754944e-38, %v945_v29  ;;  %vm944_vm6 = vcmp.eq.f32.partialorder %v943_v33, 8.507059e+37 }
 0x466   :  { %v1557_v46 = vpop.eup %1556 }
 0x467   :  { %v2004_v18 = vpop.eup %1558  ;;  %v935_v22 = vmul.f32 %v1557_v46, %v919_v17  ;;  %v2006_v2 = vpop.xlane.xlu2 %1127  ;;  %vm940_vm2 = vweird.f32 %v1557_v46 }
 0x468   :  { %v1561_v25 = vpop.eup %1560  ;;  %v1041_v28 = vmul.f32 %v2004_v18, %v1991_v37  ;;  %vm941_vm5 = vmor %vm939_vm4, %vm940_vm2  ;;  %vm1046_vm7 = vweird.f32 %v2004_v18  ;;  %1562 = vrcp.f32 %v2006_v2  ;;  %vm1137_vm1 = vweird.f32 %v2006_v2 }
 0x469   :  { %v936_v27 = vsub.f32 1.0, %v935_v22  ;;  %v1027_v4 = vmul.f32 %v1561_v25, %v1969_v40  ;;  %vm1032_vm8 = vweird.f32 %v1561_v25  ;;  %vm1047_vm10 = vmor %vm1045_vm9, %vm1046_vm7  ;;  %vm769_vm9 = vcmask 519552  }
 0x46a   :  { %v1042_v36 = vsub.f32 1.0, %v1041_v28  ;;  %vm1033_vm12 = vmor %vm1031_vm11, %vm1032_vm8  ;;  %vm663_vm8 = vcmask 388352   ;;  %vm981_vm11 = vcmask 781952  }
 0x46b   :  { %v937_v32 = vmul.f32 %v1557_v46, %v936_v27  ;;  %v1028_v16 = vsub.f32 1.0, %v1027_v4 }
 0x46c   :  { %v1043_v10 = vmul.f32 %v2004_v18, %v1042_v36 }
 0x46d   :  { %v938_v35 = vadd.f32 %v1557_v46, %v937_v32  ;;  %v1029_v15 = vmul.f32 %v1561_v25, %v1028_v16 }
 0x46e   :  { %v1044_v6 = vadd.f32 %v2004_v18, %v1043_v10  ;;  %v1563_v40 = vpop.eup %1562 }
 0x46f   :  { %v942_v3 = vsel %vm941_vm5, %v1557_v46, %v938_v35  ;;  %v952_v38 = vpop.permute.xlu2 %951  ;;  %v1030_v62 = vadd.f32 %v1561_v25, %v1029_v15  ;;  %v1133_v61 = vmul.f32 %v1563_v40, %v2006_v2  ;;  %vm1138_vm15 = vweird.f32 %v1563_v40 }
 0x470   :  { %v947_v63 = vsel %vm944_vm6, %v946_v8, %v942_v3  ;;  %964 = vmatpush.bf16.msrb.mxu0 %v952_v38  ;;  %v1048_v5 = vsel %vm1047_vm10, %v2004_v18, %v1044_v6  ;;  %vm1139_vm2 = vmor %vm1137_vm1, %vm1138_vm15  ;;  %vm875_vm10 = vcmask 650752  }
 0x471   :  { %v949_v43 = vmul.f32 %v1973_v57, %v947_v63  ;;  %v1053_v55 = vsel %vm1050_vm13, %v1052_v7, %v1048_v5  ;;  %v1134_v0 = vsub.f32 1.0, %v1133_v61  ;;  %v1484_v5 = vld [vmem:[%s2095_s6 + $0x28] sm:$0xff]  ;;  %v1483_v7 = vld [vmem:[%s2095_s6 + $0x20] sm:$0xff]  ;;  %vm1193_vm13 = vcmask 1044352  }
 0x472   :  { %v846_v44 = vpop.permute.xlu0 %845  ;;  %v1055_v37 = vmul.f32 %v1910_v30, %v1053_v55  ;;  %v1143_v30 = vand.u32 2147483648, %v2006_v2  ;;  %1274 = vmatpush.bf16.msrb.mxu1 %v1484_v5 }
 0x473   :  { %858 = vmatpush.bf16.msrb.mxu2 %v846_v44  ;;  %v950_v47 = vpack.c.bf16 %v949_v43, %v948_v42  ;;  %v1135_v34 = vmul.f32 %v1563_v40, %v1134_v0  ;;  %v1479_v0 = vld [vmem:[%s2095_s6] sm:$0xff] }
 0x474   :  { %v1144_v46 = vor.u32 1.1754944e-38, %v1143_v30 }
 0x475   :  { %1413 = vmatmul.msk.bf16.vlgmr.msrb.gmra.mxu0 %vm356_vm0, %v950_v47  ;;  %v1136_v11 = vadd.f32 %v1563_v40, %v1135_v34 }
 0x476   :  { %1411 = vmatmul.msk.bf16.vlgmr.msrb.gmra.mxu2 %vm356_vm0, %v844_v12  ;;  %v1034_v12 = vsel %vm1033_vm12, %v1561_v25, %v1030_v62  ;;  %1275 = vmatpush.bf16.msrb.mxu1 %v1483_v7  ;;  %vm1087_vm12 = vcmask 913152  }
 0x477   :  { %1070 = vmatpush.bf16.msra.mxu2 %v1058_v41  ;;  %v1164_v57 = vpop.permute.xlu2 %1163  ;;  %v1039_v58 = vsel %vm1036_vm14, %v1038_v54, %v1034_v12  ;;  %v1140_v14 = vsel %vm1139_vm2, %v1563_v40, %v1136_v11  ;;  %v1480_v40 = vld [vmem:[%s2095_s6 + $0x8] sm:$0xff] }
 0x478   :  { %1176 = vmatpush.bf16.msra.mxu0 %v1164_v57  ;;  %v1054_v59 = vmul.f32 %v1903_v21, %v1039_v58  ;;  %v1141_v21 = vand.u32 2147483647, %v2006_v2  ;;  %v1482_v58 = vld [vmem:[%s2095_s6 + $0x18] sm:$0xff] }
 0x47a   :  { %v1056_v60 = vpack.c.bf16 %v1055_v37, %v1054_v59  ;;  %vm1142_vm4 = vcmp.eq.f32.partialorder %v1141_v21, 8.507059e+37  ;;  %1276 = vmatpush.bf16.msrb.mxu1 %v1482_v58  ;;  %v1481_v59 = vld [vmem:[%s2095_s6 + $0x10] sm:$0xff]  ;;  %s1600_s6 = smov [#allocation3]  }
 0x47b   :  { %v1145_v19 = vsel %vm1142_vm4, %v1144_v46, %v1140_v14  ;;  %s1292_s18 = sshll.u32 %s1600_s6, 4  ;;  %s1293_s18 = int_to_ptr.vmem [resolvable:$true] %s1292_s18 }
 0x47c   :  { %v1160_v26 = vmul.f32 %v1977_v24, %v1145_v19 }
 0x47e   :  { %1277 = vmatpush.bf16.msrb.mxu1 %v1481_v59 }
 0x482   :  { %v542_v28 = vpop.f32.mrf.mxu0  ;;  %1278 = vmatpush.bf16.msrb.mxu1 %v1480_v40 }
 0x483   :  { %v547_v16 = vpack.c.bf16 %v542_v28, %v542_v28 }
 0x486   :  { %1415 = vmatmul.msk.bf16.vlgmr.msra.gmra.mxu2 %vm356_vm0, %v1056_v60  ;;  %1279 = vmatpush.bf16.msrb.mxu1 %v1479_v0 }
 0x48a   :  { %v544_v29 = vpop.f32.mrf.mxu0 }
 0x48b   :  { %v548_v24 = vpack.c.bf16 %v544_v29, %v544_v29 }
 0x49d   :  { %v1131_v1 = vpop.xlane.xlu0 %1130 }
 0x49e   :  { %1564 = vrcp.f32 %v1131_v1  ;;  %v1157_v48 = vand.u32 2147483648, %v1131_v1  ;;  %v1155_v13 = vand.u32 2147483647, %v1131_v1  ;;  %vm1151_vm5 = vweird.f32 %v1131_v1 }
 0x4a0   :  { %v1158_v22 = vor.u32 1.1754944e-38, %v1157_v48  ;;  %vm1156_vm7 = vcmp.eq.f32.partialorder %v1155_v13, 8.507059e+37 }
 0x4a4   :  { %v1565_v9 = vpop.eup %1564 }
 0x4a5   :  { %v1147_v45 = vmul.f32 %v1565_v9, %v1131_v1  ;;  %vm1152_vm3 = vweird.f32 %v1565_v9 }
 0x4a6   :  { %vm1153_vm6 = vmor %vm1151_vm5, %vm1152_vm3 }
 0x4a7   :  { %v1148_v56 = vsub.f32 1.0, %v1147_v45  ;;  %v1501_v45 = vld [vmem:[%s2099_s10] ss:$0 sm:$0xff] }
 0x4a9   :  { %v1149_v17 = vmul.f32 %v1565_v9, %v1148_v56 }
 0x4ab   :  { %v1150_v18 = vadd.f32 %v1565_v9, %v1149_v17  ;;  %v658_v62 = vpop.permute.xlu1 %657 }
 0x4ad   :  { %v1154_v23 = vsel %vm1153_vm6, %v1565_v9, %v1150_v18 }
 0x4ae   :  { %v1159_v25 = vsel %vm1156_vm7, %v1158_v22, %v1154_v23 }
 0x4af   :  { %v1161_v2 = vmul.f32 %v1993_v39, %v1159_v25 }
 0x4b1   :  { %v1162_v27 = vpack.c.bf16 %v1161_v2, %v1160_v26 }
 0x4b3   :  { %1417 = vmatmul.msk.bf16.vlgmr.msra.gmra.mxu0 %vm356_vm0, %v1162_v27  ;;  %vm557_vm0 = vcmask 257152   ;;  %v660_v57 = vpop.permute.xlu0 %659 }
 0x4b8   :  { %v754_v31 = vpop.f32.mrf.mxu0 }
 0x4b9   :  { %v759_v3 = vpack.c.bf16 %v754_v31, %v754_v31 }
 0x4c0   :  { %v756_v32 = vpop.f32.mrf.mxu0 }
 0x4c1   :  { %v760_v43 = vpack.c.bf16 %v756_v32, %v756_v32 }
 0x4f2   :  { %v966_v33 = vpop.f32.mrf.mxu0 }
 0x4f3   :  { %v971_v63 = vpack.c.bf16 %v966_v33, %v966_v33 }
 0x4f9   :  { %v860_v4 = vpop.f32.mrf.mxu2 }
 0x4fa   :  { %v865_v20 = vpack.c.bf16 %v860_v4, %v860_v4  ;;  %v968_v35 = vpop.f32.mrf.mxu0 }
 0x4fb   :  { %v972_v36 = vpack.c.bf16 %v968_v35, %v968_v35 }
 0x4fc   :  { %869 = vrot.lane.b32.xlu2 %v865_v20, %s1595_s21 }
 0x4fd   :  { %977 = vrot.lane.b32.xlu0 %v972_v36, %s1594_s20 }
 0x501   :  { %v862_v50 = vpop.f32.mrf.mxu2 }
 0x502   :  { %v866_v8 = vpack.c.bf16 %v862_v50, %v862_v50 }
 0x504   :  { %553 = vrot.lane.b32.xlu2 %v548_v24, %s1596_s9  ;;  %871 = vrot.lane.b32.xlu1 %v866_v8, %s1595_s21 }
 0x509   :  { %v1072_v39 = vpop.f32.mrf.mxu2 }
 0x50a   :  { %v1077_v38 = vpack.c.bf16 %v1072_v39, %v1072_v39 }
 0x50c   :  { %763 = vrot.lane.b32.xlu2 %v759_v3, %s1598_s22  ;;  %1081 = vrot.lane.b32.xlu1 %v1077_v38, %s1593_s7 }
 0x511   :  { %v1074_v42 = vpop.f32.mrf.mxu2 }
 0x512   :  { %v1078_v10 = vpack.c.bf16 %v1074_v42, %v1074_v42 }
 0x514   :  { %975 = vrot.lane.b32.xlu2 %v971_v63, %s1594_s20  ;;  %551 = vrot.lane.b32.xlu1 %v547_v16, %s1596_s9  ;;  %s1602_s20 = smov 8  }
 0x51c   :  { %1083 = vrot.lane.b32.xlu2 %v1078_v10, %s1593_s7  ;;  %765 = vrot.lane.b32.xlu1 %v760_v43, %s1598_s22 }
 0x530   :  { %v1178_v44 = vpop.f32.mrf.mxu0 }
 0x531   :  { %v1183_v41 = vpack.c.bf16 %v1178_v44, %v1178_v44 }
 0x533   :  { %1187 = vrot.lane.b32.xlu0 %v1183_v41, %s1592_s2 }
 0x538   :  { %v1180_v47 = vpop.f32.mrf.mxu0 }
 0x539   :  { %v1184_v15 = vpack.c.bf16 %v1180_v47, %v1180_v47 }
 0x53b   :  { %1189 = vrot.lane.b32.xlu1 %v1184_v15, %s1592_s2 }
 0x556   :  { %v870_v6 = vpop.permute.xlu2 %869 }
 0x55e   :  { %v554_v49 = vpop.permute.xlu2 %553 }
 0x55f   :  { %559 = vst.msk [vmem:[#allocation2 + $0x4] sm:$0xf] %vm557_vm0, %v554_v49 }
 0x560   :  { %665 = vst.msk [vmem:[#allocation2 + $0x4] sm:$0xf] %vm663_vm8, %v660_v57 }
 0x566   :  { %v764_v12 = vpop.permute.xlu2 %763 }
 0x56e   :  { %v976_v37 = vpop.permute.xlu2 %975 }
 0x56f   :  { %v978_v61 = vpop.permute.xlu0 %977 }
 0x576   :  { %v872_v53 = vpop.permute.xlu1 %871  ;;  %v1084_v1 = vpop.permute.xlu2 %1083 }
 0x57e   :  { %v1082_v54 = vpop.permute.xlu1 %1081 }
 0x586   :  { %v552_v55 = vpop.permute.xlu1 %551 }
 0x587   :  { %558 = vst.msk [vmem:[#allocation2] sm:$0xf] %vm557_vm0, %v552_v55 }
 0x588   :  { %664 = vst.msk [vmem:[#allocation2] sm:$0xf] %vm663_vm8, %v658_v62 }
 0x589   :  { %770 = vst.msk [vmem:[#allocation2] sm:$0xf] %vm769_vm9, %v764_v12 }
 0x58a   :  { %876 = vst.msk [vmem:[#allocation2] sm:$0xf] %vm875_vm10, %v870_v6 }
 0x58b   :  { %982 = vst.msk [vmem:[#allocation2] sm:$0xf] %vm981_vm11, %v976_v37 }
 0x58c   :  { %1088 = vst.msk [vmem:[#allocation2] sm:$0xf] %vm1087_vm12, %v1082_v54 }
 0x58e   :  { %v766_v60 = vpop.permute.xlu1 %765 }
 0x58f   :  { %771 = vst.msk [vmem:[#allocation2 + $0x4] sm:$0xf] %vm769_vm9, %v766_v60 }
 0x590   :  { %877 = vst.msk [vmem:[#allocation2 + $0x4] sm:$0xf] %vm875_vm10, %v872_v53 }
 0x591   :  { %983 = vst.msk [vmem:[#allocation2 + $0x4] sm:$0xf] %vm981_vm11, %v978_v61 }
 0x592   :  { %1089 = vst.msk [vmem:[#allocation2 + $0x4] sm:$0xf] %vm1087_vm12, %v1084_v1 }
 0x5a5   :  { %v1188_v34 = vpop.permute.xlu0 %1187 }
 0x5a6   :  { %1194 = vst.msk [vmem:[#allocation2] sm:$0xf] %vm1193_vm13, %v1188_v34 }
 0x5ad   :  { %v1190_v9 = vpop.permute.xlu1 %1189 }
 0x5ae   :  { %1195 = vst.msk [vmem:[#allocation2 + $0x4] sm:$0xf] %vm1193_vm13, %v1190_v9 }
 0x5b5   :  { %v1478_v11 = vld [vmem:[#allocation2] sm:$0xff] }
 0x5b6   :  { %1280 = vmatmul.bf16.vlgmr.msrb.gmra.mxu1 %v1478_v11 }
 0x633   :  { %v1281_v30 = vpop.f32.mrf.mxu1 }
 0x634   :  { %v1282_v21 = vadd.f32 %v1501_v45, %v1281_v30 }
 0x636   :  { %1286 = vst [vmem:[#allocation3] sm:$0xff] %v1282_v21 }
 0x63b   :  { %v1283_v56 = vpop.f32.mrf.mxu1 }
 0x63c   :  { %v1284_v48 = vadd.f32 %v1501_v45, %v1283_v56 }
 0x63e   :  { %1287 = vst [vmem:[#allocation3 + $0x8] sm:$0xff] %v1284_v48 }
 0x63f   :  { %1300 = dma.vmem_to_hbm [thread:$0]  %s1293_s18, 256, %s1295_s8, [#allocation4], %s1601_s19, %s1601_s19, %s1602_s20  }
 0x640   :  { %1590 = dma.done.wait [#allocation4], 256  }
 0x641   :  { %1591 = vsyncadd [#allocation4], 4294967040 }
 0x642   :  { %1305 = vsyncpa [#allocation4], 1 }

</bundles_post_ra>
